<compile_context>
chip_gen: v6e
topology: v6e:2x2x1
jax: 0.10.0
libtpu: 0.0.40
codegen_flags: <defaults>
</compile_context>

<pallas_src>
import jax
import jax.numpy as jnp
from jax.experimental import pallas as pl
from jax.experimental.pallas import tpu as pltpu

N_HIDDEN = 100   # fc hidden width (n = 100 in the PyTorch module)
LANE = 128
SUBLANE = 8


def _round_up(x, m):
    return ((x + m - 1) // m) * m


# ----------------------------- parameter init ------------------------------
def init_fc_params(key, in_dim, out_dim, num_layers):
    """fc(in, out, num_layers): Linear(in,100), num_layers x Linear(100,100),
    Linear(100,out). Weights stored pre-transposed as [in, out], biases [1, out]."""
    dims = [in_dim] + [N_HIDDEN] * (num_layers + 1) + [out_dim]
    params = []
    for i in range(len(dims) - 1):
        fan_in, fan_out = dims[i], dims[i + 1]
        key, kw, kb = jax.random.split(key, 3)
        bound = 1.0 / float(fan_in) ** 0.5  # PyTorch Linear default init range
        w = jax.random.uniform(kw, (fan_in, fan_out), jnp.float32, -bound, bound)
        b = jax.random.uniform(kb, (1, fan_out), jnp.float32, -bound, bound)
        params.append((w, b))
    return key, params


def init_deeponet_params(key, dim, num_hot_spots, p):
    n_layers = 4
    key, branch1 = init_fc_params(key, num_hot_spots * 2, p, n_layers)
    key, trunk1 = init_fc_params(key, dim, p, n_layers)
    key, c_layer = init_fc_params(key, p, p, n_layers)
    key, c2_layer = init_fc_params(key, 2 * num_hot_spots + 1, 1, 3)
    return {"branch1": branch1, "trunk1": trunk1, "c_layer": c_layer,
            "c2_layer": c2_layer}


# ----------------------------- weight packing -------------------------------
def _pad_first(w, d_pad):
    """First-layer weight [fan_in, fan_out] -> [fan_in, d_pad] (zero-padded N)."""
    fi, fo = w.shape
    return jnp.zeros((fi, d_pad), jnp.float32).at[:, :fo].set(w)


def _pack_stack(wbs, d_pad, skip_first):
    """Zero-pad hidden/output layers of an fc stack to [d_pad, d_pad] and stack
    -> [L', d_pad, d_pad].  Biases of ALL layers (including the first) are
    padded & stacked -> [L, 1, d_pad].  Padding is exact: tanh(0)=0 and zero
    rows/cols/biases keep padded lanes at 0."""
    ws, bs = [], []
    for idx, (w, b) in enumerate(wbs):
        fo = w.shape[1]
        bs.append(jnp.zeros((1, d_pad), jnp.float32).at[:, :fo].set(b))
        if skip_first and idx == 0:
            continue
        fi = w.shape[0]
        ws.append(jnp.zeros((d_pad, d_pad), jnp.float32).at[:fi, :fo].set(w))
    return jnp.stack(ws, axis=0), jnp.stack(bs, axis=0)


# --------------------------------- kernel ----------------------------------
def make_deeponet_kernel(n_b1, n_tr, n_c, n_c2, dot_dtype):
    def _stack(s, w_ref, b_ref, w0, b0, steps, act_last):
        """fc tail: for each layer, s = dot(tanh(s), W) + b.  tanh/bias in f32,
        dot operands in dot_dtype (bf16 by default), f32 accumulation."""
        for l in range(steps):
            a = jnp.tanh(s).astype(dot_dtype)
            s = jnp.dot(a, w_ref[w0 + l],
                        preferred_element_type=jnp.float32) + b_ref[b0 + l]
        return jnp.tanh(s) if act_last else s

    def kernel(f_ref, y_ref,
               wb1f_ref, wb1r_ref, bb1_ref,
               wtr0_ref, wtrr_ref, btr_ref,
               wc_ref, bc_ref,
               wc2f_ref, wc2y_ref, wc2r_ref, bc2_ref,
               out_ref):
        # Shared first activation (reused by branch1, trunk1, c2_layer).
        tf = jnp.tanh(f_ref[...].astype(jnp.float32))      # [TB, 2H]
        ty = jnp.tanh(y_ref[...].astype(jnp.float32))      # [TB, 1]
        tfd = tf.astype(dot_dtype)

        # First-layer pre-activations.  trunk1 / c2_layer y-columns are K=1,
        # so they are VPU broadcast multiplies (no MXU pass).
        s_b1 = (jnp.dot(tfd, wb1f_ref[...], preferred_element_type=jnp.float32)
                + bb1_ref[0])
        s_tr = ty * wtr0_ref[...] + btr_ref[0]
        s_c2 = (jnp.dot(tfd, wc2f_ref[...], preferred_element_type=jnp.float32)
                + ty * wc2y_ref[...] + bc2_ref[0])

        # Short stacks first so first-layer temps die early.
        trunk = _stack(s_tr, wtrr_ref, btr_ref, 0, 1, n_tr - 1, True)    # trunk1
        alpha = _stack(s_c2, wc2r_ref, bc2_ref, 0, 1, n_c2 - 1, False)   # col 0 valid

        h = _stack(s_b1, wb1r_ref, bb1_ref, 0, 1, n_b1 - 1, False)       # branch1
        branch = _stack(h, wc_ref, bc_ref, 0, 0, n_c, False)             # c_layer

        out_ref[...] = (jnp.sum(branch * trunk, axis=-1, keepdims=True)
                        + alpha[:, 0:1]).astype(out_ref.dtype)

    return kernel


# -------------------------------- wrapper ----------------------------------
def deeponet_forward(y, f_real, f_imag, params, *, tile_b=4096,
                     dot_dtype=jnp.bfloat16):
    """deeponet.forward((y, f_real, f_imag)) -> [B].

    dot_dtype controls the MXU operand dtype (bf16 default, f32 accumulation);
    pass jnp.float32 for a strict-precision mode."""
    assert tile_b % SUBLANE == 0
    B = y.shape[0]
    H = f_real.shape[1]
    two_h = 2 * H
    p = params["branch1"][-1][0].shape[1]
    d_pad = _round_up(max(N_HIDDEN, p), LANE)

    # trunk1's first Linear must have in_features == 1 (forward uses unsqueeze(y,1)).
    assert params["trunk1"][0][0].shape[0] == 1
    assert params["c2_layer"][0][0].shape[0] == two_h + 1

    # Batch tile: >= 2 grid steps when possible (both v7x TensorCores busy),
    # capped at tile_b (v7x VMEM-safe cap ~4096).
    b8 = _round_up(B, SUBLANE)
    tb = min(tile_b, max(SUBLANE, _round_up((b8 + 1) // 2, SUBLANE)))
    b_pad = _round_up(B, tb)

    # Inputs: f = cat(f_real, f_imag) [B, 2H] and y [B, 1], batch-padded with
    # zeros (padded rows stay finite through tanh and are sliced off).
    f = jnp.concatenate([f_real, f_imag], axis=1).astype(jnp.float32)
    fp = jnp.zeros((b_pad, two_h), jnp.float32).at[:B].set(f)
    yp = jnp.zeros((b_pad, 1), jnp.float32).at[:B].set(
        y.reshape(B, 1).astype(jnp.float32))

    # Weight packing.  First layers keep their own (small) K; hidden/output
    # layers are padded to d_pad and stacked.  MXU operands pre-cast to bf16.
    wb1f = _pad_first(params["branch1"][0][0], d_pad).astype(dot_dtype)   # [2H, D]
    wb1r, bb1 = _pack_stack(params["branch1"], d_pad, skip_first=True)
    wtr0 = _pad_first(params["trunk1"][0][0], d_pad)                      # [1, D] f32
    wtrr, btr = _pack_stack(params["trunk1"], d_pad, skip_first=True)
    wc, bc = _pack_stack(params["c_layer"], d_pad, skip_first=False)
    w_c2_first = params["c2_layer"][0][0]                                 # [2H+1, 1]
    wc2f = _pad_first(w_c2_first[:two_h], d_pad).astype(dot_dtype)        # [2H, D]
    wc2y = _pad_first(w_c2_first[two_h:two_h + 1], d_pad)                 # [1, D] f32
    wc2r, bc2 = _pack_stack(params["c2_layer"], d_pad, skip_first=True)

    wb1r = wb1r.astype(dot_dtype)
    wtrr = wtrr.astype(dot_dtype)
    wc = wc.astype(dot_dtype)
    wc2r = wc2r.astype(dot_dtype)

    n_b1 = len(params["branch1"])
    n_tr = len(params["trunk1"])
    n_c = len(params["c_layer"])
    n_c2 = len(params["c2_layer"])

    def resident(arr):
        nd = arr.ndim
        return pl.BlockSpec(arr.shape, lambda i, _nd=nd: (0,) * _nd)

    weights = [wb1f, wb1r, bb1, wtr0, wtrr, btr, wc, bc, wc2f, wc2y, wc2r, bc2]

    in_specs = ([pl.BlockSpec((tb, two_h), lambda i: (i, 0)),
                 pl.BlockSpec((tb, 1), lambda i: (i, 0))]
                + [resident(w) for w in weights])

    out = pl.pallas_call(
        make_deeponet_kernel(n_b1, n_tr, n_c, n_c2, dot_dtype),
        out_shape=jax.ShapeDtypeStruct((b_pad, 1), jnp.float32),
        grid=(b_pad // tb,),
        in_specs=in_specs,
        out_specs=pl.BlockSpec((tb, 1), lambda i: (i, 0)),
        compiler_params=pltpu.CompilerParams(
            dimension_semantics=("parallel",),
            vmem_limit_bytes=48 * 1024 * 1024),
    )(fp, yp, *weights)

    return out[:B, 0]   # torch.sum(..., dim=-1, keepdim=False) -> [B]


# ----------------------------- pure-JAX reference ---------------------------
def _mlp_ref(s, wbs, activation_last):
    for w, b in wbs:
        s = jnp.tanh(s)
        s = jnp.dot(s, w, preferred_element_type=jnp.float32) + b
    if activation_last:
        s = jnp.tanh(s)
    return s


def deeponet_reference(y, f_real, f_imag, params):
    B = y.shape[0]
    y2 = y.reshape(B, 1).astype(jnp.float32)
    f = jnp.concatenate([f_real, f_imag], axis=1).astype(jnp.float32)
    branch = _mlp_ref(_mlp_ref(f, params["branch1"], False),
                      params["c_layer"], False)
    trunk = _mlp_ref(y2, params["trunk1"], True)
    alpha = _mlp_ref(jnp.concatenate([f, y2], axis=1), params["c2_layer"], False)
    return jnp.sum(branch * trunk, axis=-1) + alpha[:, 0]


if __name__ == "__main__":
    # Small shapes consistent with the module: dim=1 (y is a scalar per row,
    # required by cat((f, unsqueeze(y,1)), dim=1) in forward), H hot spots.
    B, H, P, DIM = 8, 4, 32, 1

    key = jax.random.PRNGKey(0)
    kp, ky, kr, ki = jax.random.split(key, 4)
    params = init_deeponet_params(kp, DIM, H, P)

    y = jax.random.normal(ky, (B,), jnp.float32)
    f_real = jax.random.normal(kr, (B, H), jnp.float32)
    f_imag = jax.random.normal(ki, (B, H), jnp.float32)

    out = jax.block_until_ready(deeponet_forward(y, f_real, f_imag, params))
    ref = deeponet_reference(y, f_real, f_imag, params)
    assert out.shape == (B,), out.shape
    # bf16 MXU operands (f32 accumulation) vs f32 reference -> loose tolerance.
    assert jnp.allclose(out, ref, rtol=5e-2, atol=5e-2), (out, ref)

    # Second config: non-multiple-of-tile batch -> multi-step parallel grid +
    # padded rows exercised.
    B2 = 300
    ky2, kr2, ki2 = jax.random.split(jax.random.PRNGKey(1), 3)
    y_b = jax.random.normal(ky2, (B2,), jnp.float32)
    fr_b = jax.random.normal(kr2, (B2, H), jnp.float32)
    fi_b = jax.random.normal(ki2, (B2, H), jnp.float32)
    out_b = jax.block_until_ready(deeponet_forward(y_b, fr_b, fi_b, params))
    ref_b = deeponet_reference(y_b, fr_b, fi_b, params)
    assert out_b.shape == (B2,), out_b.shape
    assert jnp.allclose(out_b, ref_b, rtol=5e-2, atol=5e-2)

    print("KERNEL_OK")
</pallas_src>

<mosaic_0001>
module attributes {stable_mosaic.version = 11 : i64} {
  func.func @kernel(%arg0: i32, %arg1: memref<8x8xf32, #tpu.memory_space<vmem>>, %arg2: memref<8x1xf32, #tpu.memory_space<vmem>>, %arg3: memref<8x128xbf16, #tpu.memory_space<vmem>>, %arg4: memref<5x128x128xbf16, #tpu.memory_space<vmem>>, %arg5: memref<6x1x128xf32, #tpu.memory_space<vmem>>, %arg6: memref<1x128xf32, #tpu.memory_space<vmem>>, %arg7: memref<5x128x128xbf16, #tpu.memory_space<vmem>>, %arg8: memref<6x1x128xf32, #tpu.memory_space<vmem>>, %arg9: memref<6x128x128xbf16, #tpu.memory_space<vmem>>, %arg10: memref<6x1x128xf32, #tpu.memory_space<vmem>>, %arg11: memref<8x128xbf16, #tpu.memory_space<vmem>>, %arg12: memref<1x128xf32, #tpu.memory_space<vmem>>, %arg13: memref<4x128x128xbf16, #tpu.memory_space<vmem>>, %arg14: memref<5x1x128xf32, #tpu.memory_space<vmem>>, %arg15: memref<8x1xf32, #tpu.memory_space<vmem>>) attributes {dimension_semantics = [#tpu.dimension_semantics<parallel>], iteration_bounds = array<i64: 1>, scalar_prefetch = 0 : i64, scratch_operands = 0 : i64, tpu.core_type = #tpu.core_type<tc>, window_params = [{transform_indices = @transform_0, window_bounds = array<i64: 8, 8>}, {transform_indices = @transform_1, window_bounds = array<i64: 8, 1>}, {pipeline_mode = #tpu.pipeline_mode<synchronous>, transform_indices = @transform_2, window_bounds = array<i64: 8, 128>}, {pipeline_mode = #tpu.pipeline_mode<synchronous>, transform_indices = @transform_3, window_bounds = array<i64: 5, 128, 128>}, {pipeline_mode = #tpu.pipeline_mode<synchronous>, transform_indices = @transform_4, window_bounds = array<i64: 6, 1, 128>}, {pipeline_mode = #tpu.pipeline_mode<synchronous>, transform_indices = @transform_5, window_bounds = array<i64: 1, 128>}, {pipeline_mode = #tpu.pipeline_mode<synchronous>, transform_indices = @transform_6, window_bounds = array<i64: 5, 128, 128>}, {pipeline_mode = #tpu.pipeline_mode<synchronous>, transform_indices = @transform_7, window_bounds = array<i64: 6, 1, 128>}, {pipeline_mode = #tpu.pipeline_mode<synchronous>, transform_indices = @transform_8, window_bounds = array<i64: 6, 128, 128>}, {pipeline_mode = #tpu.pipeline_mode<synchronous>, transform_indices = @transform_9, window_bounds = array<i64: 6, 1, 128>}, {pipeline_mode = #tpu.pipeline_mode<synchronous>, transform_indices = @transform_10, window_bounds = array<i64: 8, 128>}, {pipeline_mode = #tpu.pipeline_mode<synchronous>, transform_indices = @transform_11, window_bounds = array<i64: 1, 128>}, {pipeline_mode = #tpu.pipeline_mode<synchronous>, transform_indices = @transform_12, window_bounds = array<i64: 4, 128, 128>}, {pipeline_mode = #tpu.pipeline_mode<synchronous>, transform_indices = @transform_13, window_bounds = array<i64: 5, 1, 128>}, {transform_indices = @transform_14, window_bounds = array<i64: 8, 1>}]} {
    %c0 = arith.constant 0 : index
    %c0_0 = arith.constant 0 : index
    %0 = vector.load %arg1[%c0, %c0_0] : memref<8x8xf32, #tpu.memory_space<vmem>>, vector<8x8xf32>
    %1 = math.tanh %0 : vector<8x8xf32>
    %c0_1 = arith.constant 0 : index
    %c0_2 = arith.constant 0 : index
    %2 = vector.load %arg2[%c0_1, %c0_2] : memref<8x1xf32, #tpu.memory_space<vmem>>, vector<8x1xf32>
    %3 = math.tanh %2 : vector<8x1xf32>
    %4 = arith.truncf %1 : vector<8x8xf32> to vector<8x8xbf16>
    %c0_3 = arith.constant 0 : index
    %c0_4 = arith.constant 0 : index
    %5 = vector.load %arg3[%c0_3, %c0_4] : memref<8x128xbf16, #tpu.memory_space<vmem>>, vector<8x128xbf16>
    %cst = arith.constant dense<0.000000e+00> : vector<8x128xf32>
    %6 = tpu.matmul %4, %5, %cst {dimension_numbers = #tpu.dot_dimension_numbers<[1], [0], [0], [1], [0, 0, 1, 1], [], []>} : vector<8x8xbf16>, vector<8x128xbf16>, vector<8x128xf32> -> vector<8x128xf32>
    %c0_5 = arith.constant 0 : index
    %c0_6 = arith.constant 0 : index
    %c0_7 = arith.constant 0 : index
    %7 = vector.load %arg5[%c0_5, %c0_6, %c0_7] : memref<6x1x128xf32, #tpu.memory_space<vmem>>, vector<1x1x128xf32>
    %8 = vector.shape_cast %7 : vector<1x1x128xf32> to vector<1x128xf32>
    %9 = vector.broadcast %8 : vector<1x128xf32> to vector<8x128xf32>
    %10 = arith.addf %6, %9 : vector<8x128xf32>
    %c0_8 = arith.constant 0 : index
    %c0_9 = arith.constant 0 : index
    %11 = vector.load %arg6[%c0_8, %c0_9] : memref<1x128xf32, #tpu.memory_space<vmem>>, vector<1x128xf32>
    %12 = vector.broadcast %3 : vector<8x1xf32> to vector<8x128xf32>
    %13 = vector.broadcast %11 : vector<1x128xf32> to vector<8x128xf32>
    %14 = arith.mulf %12, %13 : vector<8x128xf32>
    %c0_10 = arith.constant 0 : index
    %c0_11 = arith.constant 0 : index
    %c0_12 = arith.constant 0 : index
    %15 = vector.load %arg8[%c0_10, %c0_11, %c0_12] : memref<6x1x128xf32, #tpu.memory_space<vmem>>, vector<1x1x128xf32>
    %16 = vector.shape_cast %15 : vector<1x1x128xf32> to vector<1x128xf32>
    %17 = vector.broadcast %16 : vector<1x128xf32> to vector<8x128xf32>
    %18 = arith.addf %14, %17 : vector<8x128xf32>
    %c0_13 = arith.constant 0 : index
    %c0_14 = arith.constant 0 : index
    %19 = vector.load %arg11[%c0_13, %c0_14] : memref<8x128xbf16, #tpu.memory_space<vmem>>, vector<8x128xbf16>
    %cst_15 = arith.constant dense<0.000000e+00> : vector<8x128xf32>
    %20 = tpu.matmul %4, %19, %cst_15 {dimension_numbers = #tpu.dot_dimension_numbers<[1], [0], [0], [1], [0, 0, 1, 1], [], []>} : vector<8x8xbf16>, vector<8x128xbf16>, vector<8x128xf32> -> vector<8x128xf32>
    %c0_16 = arith.constant 0 : index
    %c0_17 = arith.constant 0 : index
    %21 = vector.load %arg12[%c0_16, %c0_17] : memref<1x128xf32, #tpu.memory_space<vmem>>, vector<1x128xf32>
    %22 = vector.broadcast %3 : vector<8x1xf32> to vector<8x128xf32>
    %23 = vector.broadcast %21 : vector<1x128xf32> to vector<8x128xf32>
    %24 = arith.mulf %22, %23 : vector<8x128xf32>
    %25 = arith.addf %20, %24 : vector<8x128xf32>
    %c0_18 = arith.constant 0 : index
    %c0_19 = arith.constant 0 : index
    %c0_20 = arith.constant 0 : index
    %26 = vector.load %arg14[%c0_18, %c0_19, %c0_20] : memref<5x1x128xf32, #tpu.memory_space<vmem>>, vector<1x1x128xf32>
    %27 = vector.shape_cast %26 : vector<1x1x128xf32> to vector<1x128xf32>
    %28 = vector.broadcast %27 : vector<1x128xf32> to vector<8x128xf32>
    %29 = arith.addf %25, %28 : vector<8x128xf32>
    %30 = math.tanh %18 : vector<8x128xf32>
    %31 = arith.truncf %30 : vector<8x128xf32> to vector<8x128xbf16>
    %c0_21 = arith.constant 0 : index
    %c0_22 = arith.constant 0 : index
    %c0_23 = arith.constant 0 : index
    %32 = vector.load %arg7[%c0_21, %c0_22, %c0_23] : memref<5x128x128xbf16, #tpu.memory_space<vmem>>, vector<1x128x128xbf16>
    %33 = vector.shape_cast %32 : vector<1x128x128xbf16> to vector<128x128xbf16>
    %cst_24 = arith.constant dense<0.000000e+00> : vector<8x128xf32>
    %34 = tpu.matmul %31, %33, %cst_24 {dimension_numbers = #tpu.dot_dimension_numbers<[1], [0], [0], [1], [0, 0, 1, 1], [], []>} : vector<8x128xbf16>, vector<128x128xbf16>, vector<8x128xf32> -> vector<8x128xf32>
    %c1 = arith.constant 1 : index
    %c0_25 = arith.constant 0 : index
    %c0_26 = arith.constant 0 : index
    %35 = vector.load %arg8[%c1, %c0_25, %c0_26] : memref<6x1x128xf32, #tpu.memory_space<vmem>>, vector<1x1x128xf32>
    %36 = vector.shape_cast %35 : vector<1x1x128xf32> to vector<1x128xf32>
    %37 = vector.broadcast %36 : vector<1x128xf32> to vector<8x128xf32>
    %38 = arith.addf %34, %37 : vector<8x128xf32>
    %39 = math.tanh %38 : vector<8x128xf32>
    %40 = arith.truncf %39 : vector<8x128xf32> to vector<8x128xbf16>
    %c1_27 = arith.constant 1 : index
    %c0_28 = arith.constant 0 : index
    %c0_29 = arith.constant 0 : index
    %41 = vector.load %arg7[%c1_27, %c0_28, %c0_29] : memref<5x128x128xbf16, #tpu.memory_space<vmem>>, vector<1x128x128xbf16>
    %42 = vector.shape_cast %41 : vector<1x128x128xbf16> to vector<128x128xbf16>
    %cst_30 = arith.constant dense<0.000000e+00> : vector<8x128xf32>
    %43 = tpu.matmul %40, %42, %cst_30 {dimension_numbers = #tpu.dot_dimension_numbers<[1], [0], [0], [1], [0, 0, 1, 1], [], []>} : vector<8x128xbf16>, vector<128x128xbf16>, vector<8x128xf32> -> vector<8x128xf32>
    %c2 = arith.constant 2 : index
    %c0_31 = arith.constant 0 : index
    %c0_32 = arith.constant 0 : index
    %44 = vector.load %arg8[%c2, %c0_31, %c0_32] : memref<6x1x128xf32, #tpu.memory_space<vmem>>, vector<1x1x128xf32>
    %45 = vector.shape_cast %44 : vector<1x1x128xf32> to vector<1x128xf32>
    %46 = vector.broadcast %45 : vector<1x128xf32> to vector<8x128xf32>
    %47 = arith.addf %43, %46 : vector<8x128xf32>
    %48 = math.tanh %47 : vector<8x128xf32>
    %49 = arith.truncf %48 : vector<8x128xf32> to vector<8x128xbf16>
    %c2_33 = arith.constant 2 : index
    %c0_34 = arith.constant 0 : index
    %c0_35 = arith.constant 0 : index
    %50 = vector.load %arg7[%c2_33, %c0_34, %c0_35] : memref<5x128x128xbf16, #tpu.memory_space<vmem>>, vector<1x128x128xbf16>
    %51 = vector.shape_cast %50 : vector<1x128x128xbf16> to vector<128x128xbf16>
    %cst_36 = arith.constant dense<0.000000e+00> : vector<8x128xf32>
    %52 = tpu.matmul %49, %51, %cst_36 {dimension_numbers = #tpu.dot_dimension_numbers<[1], [0], [0], [1], [0, 0, 1, 1], [], []>} : vector<8x128xbf16>, vector<128x128xbf16>, vector<8x128xf32> -> vector<8x128xf32>
    %c3 = arith.constant 3 : index
    %c0_37 = arith.constant 0 : index
    %c0_38 = arith.constant 0 : index
    %53 = vector.load %arg8[%c3, %c0_37, %c0_38] : memref<6x1x128xf32, #tpu.memory_space<vmem>>, vector<1x1x128xf32>
    %54 = vector.shape_cast %53 : vector<1x1x128xf32> to vector<1x128xf32>
    %55 = vector.broadcast %54 : vector<1x128xf32> to vector<8x128xf32>
    %56 = arith.addf %52, %55 : vector<8x128xf32>
    %57 = math.tanh %56 : vector<8x128xf32>
    %58 = arith.truncf %57 : vector<8x128xf32> to vector<8x128xbf16>
    %c3_39 = arith.constant 3 : index
    %c0_40 = arith.constant 0 : index
    %c0_41 = arith.constant 0 : index
    %59 = vector.load %arg7[%c3_39, %c0_40, %c0_41] : memref<5x128x128xbf16, #tpu.memory_space<vmem>>, vector<1x128x128xbf16>
    %60 = vector.shape_cast %59 : vector<1x128x128xbf16> to vector<128x128xbf16>
    %cst_42 = arith.constant dense<0.000000e+00> : vector<8x128xf32>
    %61 = tpu.matmul %58, %60, %cst_42 {dimension_numbers = #tpu.dot_dimension_numbers<[1], [0], [0], [1], [0, 0, 1, 1], [], []>} : vector<8x128xbf16>, vector<128x128xbf16>, vector<8x128xf32> -> vector<8x128xf32>
    %c4 = arith.constant 4 : index
    %c0_43 = arith.constant 0 : index
    %c0_44 = arith.constant 0 : index
    %62 = vector.load %arg8[%c4, %c0_43, %c0_44] : memref<6x1x128xf32, #tpu.memory_space<vmem>>, vector<1x1x128xf32>
    %63 = vector.shape_cast %62 : vector<1x1x128xf32> to vector<1x128xf32>
    %64 = vector.broadcast %63 : vector<1x128xf32> to vector<8x128xf32>
    %65 = arith.addf %61, %64 : vector<8x128xf32>
    %66 = math.tanh %65 : vector<8x128xf32>
    %67 = arith.truncf %66 : vector<8x128xf32> to vector<8x128xbf16>
    %c4_45 = arith.constant 4 : index
    %c0_46 = arith.constant 0 : index
    %c0_47 = arith.constant 0 : index
    %68 = vector.load %arg7[%c4_45, %c0_46, %c0_47] : memref<5x128x128xbf16, #tpu.memory_space<vmem>>, vector<1x128x128xbf16>
    %69 = vector.shape_cast %68 : vector<1x128x128xbf16> to vector<128x128xbf16>
    %cst_48 = arith.constant dense<0.000000e+00> : vector<8x128xf32>
    %70 = tpu.matmul %67, %69, %cst_48 {dimension_numbers = #tpu.dot_dimension_numbers<[1], [0], [0], [1], [0, 0, 1, 1], [], []>} : vector<8x128xbf16>, vector<128x128xbf16>, vector<8x128xf32> -> vector<8x128xf32>
    %c5 = arith.constant 5 : index
    %c0_49 = arith.constant 0 : index
    %c0_50 = arith.constant 0 : index
    %71 = vector.load %arg8[%c5, %c0_49, %c0_50] : memref<6x1x128xf32, #tpu.memory_space<vmem>>, vector<1x1x128xf32>
    %72 = vector.shape_cast %71 : vector<1x1x128xf32> to vector<1x128xf32>
    %73 = vector.broadcast %72 : vector<1x128xf32> to vector<8x128xf32>
    %74 = arith.addf %70, %73 : vector<8x128xf32>
    %75 = math.tanh %74 : vector<8x128xf32>
    %76 = math.tanh %29 : vector<8x128xf32>
    %77 = arith.truncf %76 : vector<8x128xf32> to vector<8x128xbf16>
    %c0_51 = arith.constant 0 : index
    %c0_52 = arith.constant 0 : index
    %c0_53 = arith.constant 0 : index
    %78 = vector.load %arg13[%c0_51, %c0_52, %c0_53] : memref<4x128x128xbf16, #tpu.memory_space<vmem>>, vector<1x128x128xbf16>
    %79 = vector.shape_cast %78 : vector<1x128x128xbf16> to vector<128x128xbf16>
    %cst_54 = arith.constant dense<0.000000e+00> : vector<8x128xf32>
    %80 = tpu.matmul %77, %79, %cst_54 {dimension_numbers = #tpu.dot_dimension_numbers<[1], [0], [0], [1], [0, 0, 1, 1], [], []>} : vector<8x128xbf16>, vector<128x128xbf16>, vector<8x128xf32> -> vector<8x128xf32>
    %c1_55 = arith.constant 1 : index
    %c0_56 = arith.constant 0 : index
    %c0_57 = arith.constant 0 : index
    %81 = vector.load %arg14[%c1_55, %c0_56, %c0_57] : memref<5x1x128xf32, #tpu.memory_space<vmem>>, vector<1x1x128xf32>
    %82 = vector.shape_cast %81 : vector<1x1x128xf32> to vector<1x128xf32>
    %83 = vector.broadcast %82 : vector<1x128xf32> to vector<8x128xf32>
    %84 = arith.addf %80, %83 : vector<8x128xf32>
    %85 = math.tanh %84 : vector<8x128xf32>
    %86 = arith.truncf %85 : vector<8x128xf32> to vector<8x128xbf16>
    %c1_58 = arith.constant 1 : index
    %c0_59 = arith.constant 0 : index
    %c0_60 = arith.constant 0 : index
    %87 = vector.load %arg13[%c1_58, %c0_59, %c0_60] : memref<4x128x128xbf16, #tpu.memory_space<vmem>>, vector<1x128x128xbf16>
    %88 = vector.shape_cast %87 : vector<1x128x128xbf16> to vector<128x128xbf16>
    %cst_61 = arith.constant dense<0.000000e+00> : vector<8x128xf32>
    %89 = tpu.matmul %86, %88, %cst_61 {dimension_numbers = #tpu.dot_dimension_numbers<[1], [0], [0], [1], [0, 0, 1, 1], [], []>} : vector<8x128xbf16>, vector<128x128xbf16>, vector<8x128xf32> -> vector<8x128xf32>
    %c2_62 = arith.constant 2 : index
    %c0_63 = arith.constant 0 : index
    %c0_64 = arith.constant 0 : index
    %90 = vector.load %arg14[%c2_62, %c0_63, %c0_64] : memref<5x1x128xf32, #tpu.memory_space<vmem>>, vector<1x1x128xf32>
    %91 = vector.shape_cast %90 : vector<1x1x128xf32> to vector<1x128xf32>
    %92 = vector.broadcast %91 : vector<1x128xf32> to vector<8x128xf32>
    %93 = arith.addf %89, %92 : vector<8x128xf32>
    %94 = math.tanh %93 : vector<8x128xf32>
    %95 = arith.truncf %94 : vector<8x128xf32> to vector<8x128xbf16>
    %c2_65 = arith.constant 2 : index
    %c0_66 = arith.constant 0 : index
    %c0_67 = arith.constant 0 : index
    %96 = vector.load %arg13[%c2_65, %c0_66, %c0_67] : memref<4x128x128xbf16, #tpu.memory_space<vmem>>, vector<1x128x128xbf16>
    %97 = vector.shape_cast %96 : vector<1x128x128xbf16> to vector<128x128xbf16>
    %cst_68 = arith.constant dense<0.000000e+00> : vector<8x128xf32>
    %98 = tpu.matmul %95, %97, %cst_68 {dimension_numbers = #tpu.dot_dimension_numbers<[1], [0], [0], [1], [0, 0, 1, 1], [], []>} : vector<8x128xbf16>, vector<128x128xbf16>, vector<8x128xf32> -> vector<8x128xf32>
    %c3_69 = arith.constant 3 : index
    %c0_70 = arith.constant 0 : index
    %c0_71 = arith.constant 0 : index
    %99 = vector.load %arg14[%c3_69, %c0_70, %c0_71] : memref<5x1x128xf32, #tpu.memory_space<vmem>>, vector<1x1x128xf32>
    %100 = vector.shape_cast %99 : vector<1x1x128xf32> to vector<1x128xf32>
    %101 = vector.broadcast %100 : vector<1x128xf32> to vector<8x128xf32>
    %102 = arith.addf %98, %101 : vector<8x128xf32>
    %103 = math.tanh %102 : vector<8x128xf32>
    %104 = arith.truncf %103 : vector<8x128xf32> to vector<8x128xbf16>
    %c3_72 = arith.constant 3 : index
    %c0_73 = arith.constant 0 : index
    %c0_74 = arith.constant 0 : index
    %105 = vector.load %arg13[%c3_72, %c0_73, %c0_74] : memref<4x128x128xbf16, #tpu.memory_space<vmem>>, vector<1x128x128xbf16>
    %106 = vector.shape_cast %105 : vector<1x128x128xbf16> to vector<128x128xbf16>
    %cst_75 = arith.constant dense<0.000000e+00> : vector<8x128xf32>
    %107 = tpu.matmul %104, %106, %cst_75 {dimension_numbers = #tpu.dot_dimension_numbers<[1], [0], [0], [1], [0, 0, 1, 1], [], []>} : vector<8x128xbf16>, vector<128x128xbf16>, vector<8x128xf32> -> vector<8x128xf32>
    %c4_76 = arith.constant 4 : index
    %c0_77 = arith.constant 0 : index
    %c0_78 = arith.constant 0 : index
    %108 = vector.load %arg14[%c4_76, %c0_77, %c0_78] : memref<5x1x128xf32, #tpu.memory_space<vmem>>, vector<1x1x128xf32>
    %109 = vector.shape_cast %108 : vector<1x1x128xf32> to vector<1x128xf32>
    %110 = vector.broadcast %109 : vector<1x128xf32> to vector<8x128xf32>
    %111 = arith.addf %107, %110 : vector<8x128xf32>
    %112 = math.tanh %10 : vector<8x128xf32>
    %113 = arith.truncf %112 : vector<8x128xf32> to vector<8x128xbf16>
    %c0_79 = arith.constant 0 : index
    %c0_80 = arith.constant 0 : index
    %c0_81 = arith.constant 0 : index
    %114 = vector.load %arg4[%c0_79, %c0_80, %c0_81] : memref<5x128x128xbf16, #tpu.memory_space<vmem>>, vector<1x128x128xbf16>
    %115 = vector.shape_cast %114 : vector<1x128x128xbf16> to vector<128x128xbf16>
    %cst_82 = arith.constant dense<0.000000e+00> : vector<8x128xf32>
    %116 = tpu.matmul %113, %115, %cst_82 {dimension_numbers = #tpu.dot_dimension_numbers<[1], [0], [0], [1], [0, 0, 1, 1], [], []>} : vector<8x128xbf16>, vector<128x128xbf16>, vector<8x128xf32> -> vector<8x128xf32>
    %c1_83 = arith.constant 1 : index
    %c0_84 = arith.constant 0 : index
    %c0_85 = arith.constant 0 : index
    %117 = vector.load %arg5[%c1_83, %c0_84, %c0_85] : memref<6x1x128xf32, #tpu.memory_space<vmem>>, vector<1x1x128xf32>
    %118 = vector.shape_cast %117 : vector<1x1x128xf32> to vector<1x128xf32>
    %119 = vector.broadcast %118 : vector<1x128xf32> to vector<8x128xf32>
    %120 = arith.addf %116, %119 : vector<8x128xf32>
    %121 = math.tanh %120 : vector<8x128xf32>
    %122 = arith.truncf %121 : vector<8x128xf32> to vector<8x128xbf16>
    %c1_86 = arith.constant 1 : index
    %c0_87 = arith.constant 0 : index
    %c0_88 = arith.constant 0 : index
    %123 = vector.load %arg4[%c1_86, %c0_87, %c0_88] : memref<5x128x128xbf16, #tpu.memory_space<vmem>>, vector<1x128x128xbf16>
    %124 = vector.shape_cast %123 : vector<1x128x128xbf16> to vector<128x128xbf16>
    %cst_89 = arith.constant dense<0.000000e+00> : vector<8x128xf32>
    %125 = tpu.matmul %122, %124, %cst_89 {dimension_numbers = #tpu.dot_dimension_numbers<[1], [0], [0], [1], [0, 0, 1, 1], [], []>} : vector<8x128xbf16>, vector<128x128xbf16>, vector<8x128xf32> -> vector<8x128xf32>
    %c2_90 = arith.constant 2 : index
    %c0_91 = arith.constant 0 : index
    %c0_92 = arith.constant 0 : index
    %126 = vector.load %arg5[%c2_90, %c0_91, %c0_92] : memref<6x1x128xf32, #tpu.memory_space<vmem>>, vector<1x1x128xf32>
    %127 = vector.shape_cast %126 : vector<1x1x128xf32> to vector<1x128xf32>
    %128 = vector.broadcast %127 : vector<1x128xf32> to vector<8x128xf32>
    %129 = arith.addf %125, %128 : vector<8x128xf32>
    %130 = math.tanh %129 : vector<8x128xf32>
    %131 = arith.truncf %130 : vector<8x128xf32> to vector<8x128xbf16>
    %c2_93 = arith.constant 2 : index
    %c0_94 = arith.constant 0 : index
    %c0_95 = arith.constant 0 : index
    %132 = vector.load %arg4[%c2_93, %c0_94, %c0_95] : memref<5x128x128xbf16, #tpu.memory_space<vmem>>, vector<1x128x128xbf16>
    %133 = vector.shape_cast %132 : vector<1x128x128xbf16> to vector<128x128xbf16>
    %cst_96 = arith.constant dense<0.000000e+00> : vector<8x128xf32>
    %134 = tpu.matmul %131, %133, %cst_96 {dimension_numbers = #tpu.dot_dimension_numbers<[1], [0], [0], [1], [0, 0, 1, 1], [], []>} : vector<8x128xbf16>, vector<128x128xbf16>, vector<8x128xf32> -> vector<8x128xf32>
    %c3_97 = arith.constant 3 : index
    %c0_98 = arith.constant 0 : index
    %c0_99 = arith.constant 0 : index
    %135 = vector.load %arg5[%c3_97, %c0_98, %c0_99] : memref<6x1x128xf32, #tpu.memory_space<vmem>>, vector<1x1x128xf32>
    %136 = vector.shape_cast %135 : vector<1x1x128xf32> to vector<1x128xf32>
    %137 = vector.broadcast %136 : vector<1x128xf32> to vector<8x128xf32>
    %138 = arith.addf %134, %137 : vector<8x128xf32>
    %139 = math.tanh %138 : vector<8x128xf32>
    %140 = arith.truncf %139 : vector<8x128xf32> to vector<8x128xbf16>
    %c3_100 = arith.constant 3 : index
    %c0_101 = arith.constant 0 : index
    %c0_102 = arith.constant 0 : index
    %141 = vector.load %arg4[%c3_100, %c0_101, %c0_102] : memref<5x128x128xbf16, #tpu.memory_space<vmem>>, vector<1x128x128xbf16>
    %142 = vector.shape_cast %141 : vector<1x128x128xbf16> to vector<128x128xbf16>
    %cst_103 = arith.constant dense<0.000000e+00> : vector<8x128xf32>
    %143 = tpu.matmul %140, %142, %cst_103 {dimension_numbers = #tpu.dot_dimension_numbers<[1], [0], [0], [1], [0, 0, 1, 1], [], []>} : vector<8x128xbf16>, vector<128x128xbf16>, vector<8x128xf32> -> vector<8x128xf32>
    %c4_104 = arith.constant 4 : index
    %c0_105 = arith.constant 0 : index
    %c0_106 = arith.constant 0 : index
    %144 = vector.load %arg5[%c4_104, %c0_105, %c0_106] : memref<6x1x128xf32, #tpu.memory_space<vmem>>, vector<1x1x128xf32>
    %145 = vector.shape_cast %144 : vector<1x1x128xf32> to vector<1x128xf32>
    %146 = vector.broadcast %145 : vector<1x128xf32> to vector<8x128xf32>
    %147 = arith.addf %143, %146 : vector<8x128xf32>
    %148 = math.tanh %147 : vector<8x128xf32>
    %149 = arith.truncf %148 : vector<8x128xf32> to vector<8x128xbf16>
    %c4_107 = arith.constant 4 : index
    %c0_108 = arith.constant 0 : index
    %c0_109 = arith.constant 0 : index
    %150 = vector.load %arg4[%c4_107, %c0_108, %c0_109] : memref<5x128x128xbf16, #tpu.memory_space<vmem>>, vector<1x128x128xbf16>
    %151 = vector.shape_cast %150 : vector<1x128x128xbf16> to vector<128x128xbf16>
    %cst_110 = arith.constant dense<0.000000e+00> : vector<8x128xf32>
    %152 = tpu.matmul %149, %151, %cst_110 {dimension_numbers = #tpu.dot_dimension_numbers<[1], [0], [0], [1], [0, 0, 1, 1], [], []>} : vector<8x128xbf16>, vector<128x128xbf16>, vector<8x128xf32> -> vector<8x128xf32>
    %c5_111 = arith.constant 5 : index
    %c0_112 = arith.constant 0 : index
    %c0_113 = arith.constant 0 : index
    %153 = vector.load %arg5[%c5_111, %c0_112, %c0_113] : memref<6x1x128xf32, #tpu.memory_space<vmem>>, vector<1x1x128xf32>
    %154 = vector.shape_cast %153 : vector<1x1x128xf32> to vector<1x128xf32>
    %155 = vector.broadcast %154 : vector<1x128xf32> to vector<8x128xf32>
    %156 = arith.addf %152, %155 : vector<8x128xf32>
    %157 = math.tanh %156 : vector<8x128xf32>
    %158 = arith.truncf %157 : vector<8x128xf32> to vector<8x128xbf16>
    %c0_114 = arith.constant 0 : index
    %c0_115 = arith.constant 0 : index
    %c0_116 = arith.constant 0 : index
    %159 = vector.load %arg9[%c0_114, %c0_115, %c0_116] : memref<6x128x128xbf16, #tpu.memory_space<vmem>>, vector<1x128x128xbf16>
    %160 = vector.shape_cast %159 : vector<1x128x128xbf16> to vector<128x128xbf16>
    %cst_117 = arith.constant dense<0.000000e+00> : vector<8x128xf32>
    %161 = tpu.matmul %158, %160, %cst_117 {dimension_numbers = #tpu.dot_dimension_numbers<[1], [0], [0], [1], [0, 0, 1, 1], [], []>} : vector<8x128xbf16>, vector<128x128xbf16>, vector<8x128xf32> -> vector<8x128xf32>
    %c0_118 = arith.constant 0 : index
    %c0_119 = arith.constant 0 : index
    %c0_120 = arith.constant 0 : index
    %162 = vector.load %arg10[%c0_118, %c0_119, %c0_120] : memref<6x1x128xf32, #tpu.memory_space<vmem>>, vector<1x1x128xf32>
    %163 = vector.shape_cast %162 : vector<1x1x128xf32> to vector<1x128xf32>
    %164 = vector.broadcast %163 : vector<1x128xf32> to vector<8x128xf32>
    %165 = arith.addf %161, %164 : vector<8x128xf32>
    %166 = math.tanh %165 : vector<8x128xf32>
    %167 = arith.truncf %166 : vector<8x128xf32> to vector<8x128xbf16>
    %c1_121 = arith.constant 1 : index
    %c0_122 = arith.constant 0 : index
    %c0_123 = arith.constant 0 : index
    %168 = vector.load %arg9[%c1_121, %c0_122, %c0_123] : memref<6x128x128xbf16, #tpu.memory_space<vmem>>, vector<1x128x128xbf16>
    %169 = vector.shape_cast %168 : vector<1x128x128xbf16> to vector<128x128xbf16>
    %cst_124 = arith.constant dense<0.000000e+00> : vector<8x128xf32>
    %170 = tpu.matmul %167, %169, %cst_124 {dimension_numbers = #tpu.dot_dimension_numbers<[1], [0], [0], [1], [0, 0, 1, 1], [], []>} : vector<8x128xbf16>, vector<128x128xbf16>, vector<8x128xf32> -> vector<8x128xf32>
    %c1_125 = arith.constant 1 : index
    %c0_126 = arith.constant 0 : index
    %c0_127 = arith.constant 0 : index
    %171 = vector.load %arg10[%c1_125, %c0_126, %c0_127] : memref<6x1x128xf32, #tpu.memory_space<vmem>>, vector<1x1x128xf32>
    %172 = vector.shape_cast %171 : vector<1x1x128xf32> to vector<1x128xf32>
    %173 = vector.broadcast %172 : vector<1x128xf32> to vector<8x128xf32>
    %174 = arith.addf %170, %173 : vector<8x128xf32>
    %175 = math.tanh %174 : vector<8x128xf32>
    %176 = arith.truncf %175 : vector<8x128xf32> to vector<8x128xbf16>
    %c2_128 = arith.constant 2 : index
    %c0_129 = arith.constant 0 : index
    %c0_130 = arith.constant 0 : index
    %177 = vector.load %arg9[%c2_128, %c0_129, %c0_130] : memref<6x128x128xbf16, #tpu.memory_space<vmem>>, vector<1x128x128xbf16>
    %178 = vector.shape_cast %177 : vector<1x128x128xbf16> to vector<128x128xbf16>
    %cst_131 = arith.constant dense<0.000000e+00> : vector<8x128xf32>
    %179 = tpu.matmul %176, %178, %cst_131 {dimension_numbers = #tpu.dot_dimension_numbers<[1], [0], [0], [1], [0, 0, 1, 1], [], []>} : vector<8x128xbf16>, vector<128x128xbf16>, vector<8x128xf32> -> vector<8x128xf32>
    %c2_132 = arith.constant 2 : index
    %c0_133 = arith.constant 0 : index
    %c0_134 = arith.constant 0 : index
    %180 = vector.load %arg10[%c2_132, %c0_133, %c0_134] : memref<6x1x128xf32, #tpu.memory_space<vmem>>, vector<1x1x128xf32>
    %181 = vector.shape_cast %180 : vector<1x1x128xf32> to vector<1x128xf32>
    %182 = vector.broadcast %181 : vector<1x128xf32> to vector<8x128xf32>
    %183 = arith.addf %179, %182 : vector<8x128xf32>
    %184 = math.tanh %183 : vector<8x128xf32>
    %185 = arith.truncf %184 : vector<8x128xf32> to vector<8x128xbf16>
    %c3_135 = arith.constant 3 : index
    %c0_136 = arith.constant 0 : index
    %c0_137 = arith.constant 0 : index
    %186 = vector.load %arg9[%c3_135, %c0_136, %c0_137] : memref<6x128x128xbf16, #tpu.memory_space<vmem>>, vector<1x128x128xbf16>
    %187 = vector.shape_cast %186 : vector<1x128x128xbf16> to vector<128x128xbf16>
    %cst_138 = arith.constant dense<0.000000e+00> : vector<8x128xf32>
    %188 = tpu.matmul %185, %187, %cst_138 {dimension_numbers = #tpu.dot_dimension_numbers<[1], [0], [0], [1], [0, 0, 1, 1], [], []>} : vector<8x128xbf16>, vector<128x128xbf16>, vector<8x128xf32> -> vector<8x128xf32>
    %c3_139 = arith.constant 3 : index
    %c0_140 = arith.constant 0 : index
    %c0_141 = arith.constant 0 : index
    %189 = vector.load %arg10[%c3_139, %c0_140, %c0_141] : memref<6x1x128xf32, #tpu.memory_space<vmem>>, vector<1x1x128xf32>
    %190 = vector.shape_cast %189 : vector<1x1x128xf32> to vector<1x128xf32>
    %191 = vector.broadcast %190 : vector<1x128xf32> to vector<8x128xf32>
    %192 = arith.addf %188, %191 : vector<8x128xf32>
    %193 = math.tanh %192 : vector<8x128xf32>
    %194 = arith.truncf %193 : vector<8x128xf32> to vector<8x128xbf16>
    %c4_142 = arith.constant 4 : index
    %c0_143 = arith.constant 0 : index
    %c0_144 = arith.constant 0 : index
    %195 = vector.load %arg9[%c4_142, %c0_143, %c0_144] : memref<6x128x128xbf16, #tpu.memory_space<vmem>>, vector<1x128x128xbf16>
    %196 = vector.shape_cast %195 : vector<1x128x128xbf16> to vector<128x128xbf16>
    %cst_145 = arith.constant dense<0.000000e+00> : vector<8x128xf32>
    %197 = tpu.matmul %194, %196, %cst_145 {dimension_numbers = #tpu.dot_dimension_numbers<[1], [0], [0], [1], [0, 0, 1, 1], [], []>} : vector<8x128xbf16>, vector<128x128xbf16>, vector<8x128xf32> -> vector<8x128xf32>
    %c4_146 = arith.constant 4 : index
    %c0_147 = arith.constant 0 : index
    %c0_148 = arith.constant 0 : index
    %198 = vector.load %arg10[%c4_146, %c0_147, %c0_148] : memref<6x1x128xf32, #tpu.memory_space<vmem>>, vector<1x1x128xf32>
    %199 = vector.shape_cast %198 : vector<1x1x128xf32> to vector<1x128xf32>
    %200 = vector.broadcast %199 : vector<1x128xf32> to vector<8x128xf32>
    %201 = arith.addf %197, %200 : vector<8x128xf32>
    %202 = math.tanh %201 : vector<8x128xf32>
    %203 = arith.truncf %202 : vector<8x128xf32> to vector<8x128xbf16>
    %c5_149 = arith.constant 5 : index
    %c0_150 = arith.constant 0 : index
    %c0_151 = arith.constant 0 : index
    %204 = vector.load %arg9[%c5_149, %c0_150, %c0_151] : memref<6x128x128xbf16, #tpu.memory_space<vmem>>, vector<1x128x128xbf16>
    %205 = vector.shape_cast %204 : vector<1x128x128xbf16> to vector<128x128xbf16>
    %cst_152 = arith.constant dense<0.000000e+00> : vector<8x128xf32>
    %206 = tpu.matmul %203, %205, %cst_152 {dimension_numbers = #tpu.dot_dimension_numbers<[1], [0], [0], [1], [0, 0, 1, 1], [], []>} : vector<8x128xbf16>, vector<128x128xbf16>, vector<8x128xf32> -> vector<8x128xf32>
    %c5_153 = arith.constant 5 : index
    %c0_154 = arith.constant 0 : index
    %c0_155 = arith.constant 0 : index
    %207 = vector.load %arg10[%c5_153, %c0_154, %c0_155] : memref<6x1x128xf32, #tpu.memory_space<vmem>>, vector<1x1x128xf32>
    %208 = vector.shape_cast %207 : vector<1x1x128xf32> to vector<1x128xf32>
    %209 = vector.broadcast %208 : vector<1x128xf32> to vector<8x128xf32>
    %210 = arith.addf %206, %209 : vector<8x128xf32>
    %211 = arith.mulf %210, %75 : vector<8x128xf32>
    %cst_156 = arith.constant dense<0.000000e+00> : vector<8xf32>
    %212 = vector.multi_reduction <add>, %211, %cst_156 [1] : vector<8x128xf32> to vector<8xf32>
    %213 = vector.shape_cast %212 : vector<8xf32> to vector<8x1xf32>
    %214 = vector.extract_strided_slice %111 {offsets = [0, 0], sizes = [8, 1], strides = [1, 1]} : vector<8x128xf32> to vector<8x1xf32>
    %215 = arith.addf %213, %214 : vector<8x1xf32>
    %c0_157 = arith.constant 0 : index
    %c0_158 = arith.constant 0 : index
    %216 = vector.load %arg15[%c0_157, %c0_158] : memref<8x1xf32, #tpu.memory_space<vmem>>, vector<8x1xf32>
    tpu.vector_store %arg15[%c0_157, %c0_158], %215 {strides = array<i32>} : memref<8x1xf32, #tpu.memory_space<vmem>>, vector<8x1xf32>,
    return
  }
  func.func @transform_0(%arg0: i32) -> (i32, i32) {
    %c0_i32 = arith.constant 0 : i32
    %c0_i32_0 = arith.constant 0 : i32
    return %arg0, %c0_i32 : i32, i32
  }
  func.func @transform_1(%arg0: i32) -> (i32, i32) {
    %c0_i32 = arith.constant 0 : i32
    %c0_i32_0 = arith.constant 0 : i32
    return %arg0, %c0_i32 : i32, i32
  }
  func.func @transform_2(%arg0: i32) -> (i32, i32) {
    %c0_i32 = arith.constant 0 : i32
    %c0_i32_0 = arith.constant 0 : i32
    %c0_i32_1 = arith.constant 0 : i32
    return %c0_i32, %c0_i32_0 : i32, i32
  }
  func.func @transform_3(%arg0: i32) -> (i32, i32, i32) {
    %c0_i32 = arith.constant 0 : i32
    %c0_i32_0 = arith.constant 0 : i32
    %c0_i32_1 = arith.constant 0 : i32
    %c0_i32_2 = arith.constant 0 : i32
    return %c0_i32, %c0_i32_0, %c0_i32_1 : i32, i32, i32
  }
  func.func @transform_4(%arg0: i32) -> (i32, i32, i32) {
    %c0_i32 = arith.constant 0 : i32
    %c0_i32_0 = arith.constant 0 : i32
    %c0_i32_1 = arith.constant 0 : i32
    %c0_i32_2 = arith.constant 0 : i32
    return %c0_i32, %c0_i32_0, %c0_i32_1 : i32, i32, i32
  }
  func.func @transform_5(%arg0: i32) -> (i32, i32) {
    %c0_i32 = arith.constant 0 : i32
    %c0_i32_0 = arith.constant 0 : i32
    %c0_i32_1 = arith.constant 0 : i32
    return %c0_i32, %c0_i32_0 : i32, i32
  }
  func.func @transform_6(%arg0: i32) -> (i32, i32, i32) {
    %c0_i32 = arith.constant 0 : i32
    %c0_i32_0 = arith.constant 0 : i32
    %c0_i32_1 = arith.constant 0 : i32
    %c0_i32_2 = arith.constant 0 : i32
    return %c0_i32, %c0_i32_0, %c0_i32_1 : i32, i32, i32
  }
  func.func @transform_7(%arg0: i32) -> (i32, i32, i32) {
    %c0_i32 = arith.constant 0 : i32
    %c0_i32_0 = arith.constant 0 : i32
    %c0_i32_1 = arith.constant 0 : i32
    %c0_i32_2 = arith.constant 0 : i32
    return %c0_i32, %c0_i32_0, %c0_i32_1 : i32, i32, i32
  }
  func.func @transform_8(%arg0: i32) -> (i32, i32, i32) {
    %c0_i32 = arith.constant 0 : i32
    %c0_i32_0 = arith.constant 0 : i32
    %c0_i32_1 = arith.constant 0 : i32
    %c0_i32_2 = arith.constant 0 : i32
    return %c0_i32, %c0_i32_0, %c0_i32_1 : i32, i32, i32
  }
  func.func @transform_9(%arg0: i32) -> (i32, i32, i32) {
    %c0_i32 = arith.constant 0 : i32
    %c0_i32_0 = arith.constant 0 : i32
    %c0_i32_1 = arith.constant 0 : i32
    %c0_i32_2 = arith.constant 0 : i32
    return %c0_i32, %c0_i32_0, %c0_i32_1 : i32, i32, i32
  }
  func.func @transform_10(%arg0: i32) -> (i32, i32) {
    %c0_i32 = arith.constant 0 : i32
    %c0_i32_0 = arith.constant 0 : i32
    %c0_i32_1 = arith.constant 0 : i32
    return %c0_i32, %c0_i32_0 : i32, i32
  }
  func.func @transform_11(%arg0: i32) -> (i32, i32) {
    %c0_i32 = arith.constant 0 : i32
    %c0_i32_0 = arith.constant 0 : i32
    %c0_i32_1 = arith.constant 0 : i32
    return %c0_i32, %c0_i32_0 : i32, i32
  }
  func.func @transform_12(%arg0: i32) -> (i32, i32, i32) {
    %c0_i32 = arith.constant 0 : i32
    %c0_i32_0 = arith.constant 0 : i32
    %c0_i32_1 = arith.constant 0 : i32
    %c0_i32_2 = arith.constant 0 : i32
    return %c0_i32, %c0_i32_0, %c0_i32_1 : i32, i32, i32
  }
  func.func @transform_13(%arg0: i32) -> (i32, i32, i32) {
    %c0_i32 = arith.constant 0 : i32
    %c0_i32_0 = arith.constant 0 : i32
    %c0_i32_1 = arith.constant 0 : i32
    %c0_i32_2 = arith.constant 0 : i32
    return %c0_i32, %c0_i32_0, %c0_i32_1 : i32, i32, i32
  }
  func.func @transform_14(%arg0: i32) -> (i32, i32) {
    %c0_i32 = arith.constant 0 : i32
    %c0_i32_0 = arith.constant 0 : i32
    return %arg0, %c0_i32 : i32, i32
  }
}

</mosaic_0001>

<bundles_post_ra>
// kernel: tpu_custom_call.1
= control target key start
LH: loop header
LB: loop body
LE: loop exit
PB: predicated region body
PF: predicated region fallthrough
CT: control target
= control target key end

     0   :  { %19 = vsyncpa [#allocation3], 0  ;;  %s4204_s0 = inlined_call_operand.vmem [shape: f32[8,8], index: 0, kind: input, shape index: {}]   ;;  %s4205_s1 = inlined_call_operand.vmem [shape: f32[8,1], index: 1, kind: input, shape index: {}]   ;;  %s4206_s2 = inlined_call_operand.hbm [shape: bf16[8,128], index: 2, kind: input, shape index: {}]   ;;  %s4207_s3 = inlined_call_operand.hbm [shape: bf16[5,128,128], index: 3, kind: input, shape index: {}]   ;;  %s4208_s4 = inlined_call_operand.vmem [shape: f32[6,1,128], index: 4, kind: input, shape index: {}]   ;;  %s4209_s5 = inlined_call_operand.hbm [shape: f32[1,128], index: 5, kind: input, shape index: {}]   ;;  %s4210_s6 = inlined_call_operand.hbm [shape: bf16[5,128,128], index: 6, kind: input, shape index: {}]   ;;  %s4211_s7 = inlined_call_operand.vmem [shape: f32[6,1,128], index: 7, kind: input, shape index: {}]   ;;  %s4212_s8 = inlined_call_operand.hbm [shape: bf16[6,128,128], index: 8, kind: input, shape index: {}]   ;;  %s4213_s9 = inlined_call_operand.hbm [shape: f32[6,1,128], index: 9, kind: input, shape index: {}]   ;;  %s4214_s10 = inlined_call_operand.hbm [shape: bf16[8,128], index: 10, kind: input, shape index: {}]   ;;  %s4215_s11 = inlined_call_operand.vmem [shape: f32[1,128], index: 11, kind: input, shape index: {}]   ;;  %s4216_s12 = inlined_call_operand.hbm [shape: bf16[4,128,128], index: 12, kind: input, shape index: {}]   ;;  %s4217_s13 = inlined_call_operand.vmem [shape: f32[5,1,128], index: 13, kind: input, shape index: {}]   ;;  %s4218_s14 = inlined_call_operand.vmem [shape: f32[8,1], index: 14, kind: output, shape index: {}]  }
   0x1   :  { %20 = vsyncpa [#allocation5], 0 }
   0x2   :  { %21 = vsyncpa [#allocation8], 0 }
   0x3   :  { %22 = vsyncpa [#allocation11], 0 }
   0x4   :  { %23 = vsyncpa [#allocation14], 0  ;;  %s3793_s29 = smov [#allocation4]  }
   0x5   :  { %s43_s30 = sshll.u32 %s3793_s29, 4  ;;  %s44_s30 = int_to_ptr.vmem [resolvable:$true] %s43_s30 }
   0x6   :  { %s3631_s15 = scalar_lea.vmem %s44_s30, 5120  ;;  %p3636_p1 = scmp.lt.s32.totalorder %s44_s30, %s44_s30 }
   0x7   :  { %p3632_p0 = scmp.ne.s32.totalorder %s44_s30, %s3631_s15  ;;  %p3637_p2 = scmp.lt.s32.totalorder %s3631_s15, %s3631_s15 }
   0x9   :  { %p3638_p3 = por %p3637_p2, %p3636_p1 }
   0xb   :  { %p3639_p4 = pnand %p3638_p3, %p3632_p0 }
   0xd   :  { %3642 = shalt.err (!%p3639_p4)
}
   0xe   :  { %s3794_s16 = smov 64   ;;  %s3795_s17 = smov 4  }
   0xf   :  { %49 = dma.hbm_to_vmem [thread:$0]  %s4207_s3, 5120, %s44_s30, [#allocation5], %s3794_s16, %s3794_s16, %s3795_s17  }
  0x10   :  { %s3796_s20 = smov [#allocation7]   ;;  %s3797_s22 = smov [#allocation10]  }
  0x11   :  { %s67_s21 = sshll.u32 %s3796_s20, 4  ;;  %s93_s23 = sshll.u32 %s3797_s22, 4  ;;  %s68_s21 = int_to_ptr.vmem [resolvable:$true] %s67_s21  ;;  %s94_s23 = int_to_ptr.vmem [resolvable:$true] %s93_s23 }
  0x12   :  { %s3651_s24 = scalar_lea.vmem %s68_s21, 5120  ;;  %p3656_p6 = scmp.lt.s32.totalorder %s68_s21, %s68_s21 }
  0x13   :  { %p3652_p5 = scmp.ne.s32.totalorder %s68_s21, %s3651_s24  ;;  %p3657_p7 = scmp.lt.s32.totalorder %s3651_s24, %s3651_s24 }
  0x15   :  { %p3658_p8 = por %p3657_p7, %p3656_p6 }
  0x17   :  { %p3659_p9 = pnand %p3658_p8, %p3652_p5 }
  0x19   :  { %3662 = shalt.err (!%p3659_p9)
}
  0x1a   :  { %73 = dma.hbm_to_vmem [thread:$0]  %s4210_s6, 5120, %s68_s21, [#allocation8], %s3794_s16, %s3794_s16, %s3795_s17  }
  0x1b   :  { %s3671_s3 = scalar_lea.vmem %s94_s23, 96  ;;  %p3676_p11 = scmp.lt.s32.totalorder %s94_s23, %s94_s23 }
  0x1c   :  { %p3672_p10 = scmp.ne.s32.totalorder %s94_s23, %s3671_s3  ;;  %p3677_p12 = scmp.lt.s32.totalorder %s3671_s3, %s3671_s3 }
  0x1e   :  { %p3678_p13 = por %p3677_p12, %p3676_p11 }
  0x20   :  { %p3679_p0 = pnand %p3678_p13, %p3672_p10 }
  0x22   :  { %3682 = shalt.err (!%p3679_p0)
}
  0x23   :  { %s3798_s27 = smov 16   ;;  %s3799_s28 = smov 1  }
  0x24   :  { %99 = dma.hbm_to_vmem [thread:$0]  %s4213_s9, 96, %s94_s23, [#allocation11], %s3798_s27, %s3798_s27, %s3799_s28  }
  0x25   :  { %s3800_s15 = smov [#allocation2]   ;;  %s3801_s19 = smov [#allocation6]  }
  0x26   :  { %s34_s18 = sshll.u32 %s3800_s15, 4  ;;  %s58_s20 = sshll.u32 %s3801_s19, 4  ;;  %s35_s18 = int_to_ptr.vmem [resolvable:$true] %s34_s18  ;;  %s59_s20 = int_to_ptr.vmem [resolvable:$true] %s58_s20 }
  0x27   :  { %s3691_s6 = scalar_lea.vmem %s35_s18, 64  ;;  %p3696_p2 = scmp.lt.s32.totalorder %s35_s18, %s35_s18 }
  0x28   :  { %p3692_p1 = scmp.ne.s32.totalorder %s35_s18, %s3691_s6  ;;  %p3697_p3 = scmp.lt.s32.totalorder %s3691_s6, %s3691_s6 }
  0x2a   :  { %p3698_p4 = por %p3697_p3, %p3696_p2 }
  0x2c   :  { %p3699_p5 = pnand %p3698_p4, %p3692_p1 }
  0x2e   :  { %3702 = shalt.err (!%p3699_p5)
}
  0x2f   :  { %37 = dma.hbm_to_vmem [thread:$0]  %s4206_s2, 64, %s35_s18, [#allocation3]  }
  0x30   :  { %s3711_s24 = scalar_lea.vmem %s59_s20, 16  ;;  %s3715_s9 = scalar_lea.vmem %s59_s20, 32 }
  0x31   :  { %p3712_p6 = scmp.ne.s32.totalorder %s59_s20, %s3711_s24  ;;  %p3716_p7 = scmp.lt.s32.totalorder %s59_s20, %s59_s20 }
  0x32   :  { %p3717_p8 = scmp.lt.s32.totalorder %s3715_s9, %s3711_s24 }
  0x34   :  { %p3718_p9 = por %p3717_p8, %p3716_p7 }
  0x36   :  { %p3719_p10 = pnand %p3718_p9, %p3712_p6 }
  0x38   :  { %3722 = shalt.err (!%p3719_p10)
}
  0x39   :  { %61 = dma.hbm_to_vmem [thread:$0]  %s4209_s5, 16, %s59_s20, [#allocation5]  }
  0x3a   :  { %s3802_s26 = smov [#allocation9]   ;;  %s3803_s27 = smov [#allocation12]  }
  0x3b   :  { %s81_s3 = sshll.u32 %s3802_s26, 4  ;;  %s106_s28 = sshll.u32 %s3803_s27, 4  ;;  %s82_s3 = int_to_ptr.vmem [resolvable:$true] %s81_s3  ;;  %s107_s28 = int_to_ptr.vmem [resolvable:$true] %s106_s28 }
  0x3c   :  { %s3731_s29 = scalar_lea.vmem %s82_s3, 6144  ;;  %p3736_p12 = scmp.lt.s32.totalorder %s82_s3, %s82_s3 }
  0x3d   :  { %p3732_p11 = scmp.ne.s32.totalorder %s82_s3, %s3731_s29  ;;  %p3737_p13 = scmp.lt.s32.totalorder %s3731_s29, %s3731_s29 }
  0x3f   :  { %p3738_p0 = por %p3737_p13, %p3736_p12 }
  0x41   :  { %p3739_p1 = pnand %p3738_p0, %p3732_p11 }
  0x43   :  { %3742 = shalt.err (!%p3739_p1)
}
  0x44   :  { %87 = dma.hbm_to_vmem [thread:$0]  %s4212_s8, 6144, %s82_s3, [#allocation8], %s3794_s16, %s3794_s16, %s3795_s17  }
  0x45   :  { %s3751_s5 = scalar_lea.vmem %s107_s28, 64  ;;  %p3756_p3 = scmp.lt.s32.totalorder %s107_s28, %s107_s28 }
  0x46   :  { %p3752_p2 = scmp.ne.s32.totalorder %s107_s28, %s3751_s5  ;;  %p3757_p4 = scmp.lt.s32.totalorder %s3751_s5, %s3751_s5 }
  0x48   :  { %p3758_p5 = por %p3757_p4, %p3756_p3 }
  0x4a   :  { %p3759_p6 = pnand %p3758_p5, %p3752_p2 }
  0x4c   :  { %3762 = shalt.err (!%p3759_p6)
}
  0x4d   :  { %109 = dma.hbm_to_vmem [thread:$0]  %s4214_s10, 64, %s107_s28, [#allocation11]  }
  0x4e   :  { %s3804_s19 = smov [#allocation13]  }
  0x4f   :  { %s117_s20 = sshll.u32 %s3804_s19, 4  ;;  %s118_s20 = int_to_ptr.vmem [resolvable:$true] %s117_s20 }
  0x50   :  { %s3771_s6 = scalar_lea.vmem %s118_s20, 4096  ;;  %p3776_p8 = scmp.lt.s32.totalorder %s118_s20, %s118_s20 }
  0x51   :  { %p3772_p7 = scmp.ne.s32.totalorder %s118_s20, %s3771_s6  ;;  %p3777_p9 = scmp.lt.s32.totalorder %s3771_s6, %s3771_s6 }
  0x53   :  { %p3778_p10 = por %p3777_p9, %p3776_p8 }
  0x55   :  { %p3779_p11 = pnand %p3778_p10, %p3772_p7 }
  0x57   :  { %3782 = shalt.err (!%p3779_p11)
}
  0x58   :  { %123 = dma.hbm_to_vmem [thread:$0]  %s4216_s12, 4096, %s118_s20, [#allocation14], %s3794_s16, %s3794_s16, %s3795_s17  }
  0x59   :  { %3783 = dma.done.wait [#allocation3], 64  }
  0x5a   :  { %3784 = vsyncadd [#allocation3], 4294967232 }
  0x5b   :  { %3785 = dma.done.wait [#allocation5], 5136  }
  0x5c   :  { %3786 = vsyncadd [#allocation5], 4294962160 }
  0x5d   :  { %3787 = dma.done.wait [#allocation8], 11264  }
  0x5e   :  { %3788 = vsyncadd [#allocation8], 4294956032 }
  0x5f   :  { %3789 = dma.done.wait [#allocation11], 160  }
  0x60   :  { %3790 = vsyncadd [#allocation11], 4294967136 }
  0x61   :  { %3791 = dma.done.wait [#allocation14], 4096  }
  0x62   :  { %3792 = vsyncadd [#allocation14], 4294963200  ;;  %v3805_v0 = vmov 0.0   ;;  %v3806_v1 = vmov 0   ;;  %vm3807_vm0 = vmmov 0   ;;  %vm168_vm1 = vcmask 1043456  }
  0x63   :  { %2995 = vmatprep.subr.bf16.mxu1 %v3805_v0  ;;  %3416 = vset.pattern.permute.xlu0 %v3806_v1  ;;  %v233_v2 = vld [vmem:[#allocation12] sm:$0xf]  ;;  %v153_v3 = vld [vmem:[%s4205_s1] sm:$0xff]  ;;  %vm164_vm2 = vcmask 64512   ;;  %v3418_v12 = vld [vmem:[#allocation7 + $0x30] sm:$0xff]   ;;  %vm2593_vm3 = vcmask 7168  }
  0x64   :  { %2997 = vmatprep.mubr.msk.bf16.mxu1 %vm3807_vm0, %v3805_v0  ;;  %2989 = vmatprep.subr.bf16.mxu0 %v3805_v0  ;;  %v151_v4 = vld [vmem:[%s4204_s0] sm:$0xff]  ;;  %v243_v5 = vsel %vm168_vm1, %v233_v2, 0  ;;  %3577 = vtanh.f32 %v153_v3  ;;  %v3419_v13 = vld [vmem:[#allocation7 + $0x28] sm:$0xff]   ;;  %v3422_v16 = vld [vmem:[#allocation7 + $0x10] sm:$0xff]  }
  0x65   :  { %2991 = vmatprep.mubr.msk.bf16.mxu0 %vm3807_vm0, %v3805_v0  ;;  %v156_v6 = vld [vmem:[#allocation2] sm:$0xf]  ;;  %2996 = vmatpush3.bf16.msra.mxu1 %v243_v5  ;;  %3579 = vtanh.f32 %v151_v4  ;;  %v3420_v14 = vld [vmem:[#allocation7 + $0x20] sm:$0xff]   ;;  %v3423_v17 = vld [vmem:[#allocation7 + $0x8] sm:$0xff]  }
  0x66   :  { %v170_v7 = vsel %vm168_vm1, %v156_v6, 0  ;;  %3021 = vmatprep.subr.bf16.mxu1 %v3805_v0  ;;  %v3417_v10 = vld [vmem:[#allocation7 + $0x38] sm:$0xff]   ;;  %v3424_v18 = vld [vmem:[#allocation7] sm:$0xff]   ;;  %v3426_v20 = vld [vmem:[#allocation7 + $0x70] sm:$0xff]  }
  0x67   :  { %2990 = vmatpush3.bf16.msra.mxu0 %v170_v7  ;;  %v3421_v15 = vld [vmem:[#allocation7 + $0x18] sm:$0xff]   ;;  %v3427_v21 = vld [vmem:[#allocation7 + $0x68] sm:$0xff]   ;;  %v3428_v37 = vld [vmem:[#allocation7 + $0x60] sm:$0xff]  }
  0x68   :  { %3001 = vmatprep.subr.bf16.mxu0 %v3805_v0  ;;  %v3425_v19 = vld [vmem:[#allocation7 + $0x78] sm:$0xff]   ;;  %v3430_v39 = vld [vmem:[#allocation7 + $0x50] sm:$0xff]   ;;  %v3431_v40 = vld [vmem:[#allocation7 + $0x48] sm:$0xff]  }
  0x69   :  { %v2606_v22 = vld [vmem:[#allocation6] ss:$0 sm:$0xff]  ;;  %v2607_v23 = vld [vmem:[%s4211_s7] ss:$0 sm:$0xff]  ;;  %v3432_v41 = vld [vmem:[#allocation7 + $0x40] sm:$0xff]  }
  0x6a   :  { %v3429_v38 = vld [vmem:[#allocation7 + $0x58] sm:$0xff]   ;;  %v3434_v43 = vld [vmem:[#allocation7 + $0xb0] sm:$0xff]   ;;  %v3435_v44 = vld [vmem:[#allocation7 + $0xa8] sm:$0xff]  }
  0x6b   :  { %v3433_v42 = vld [vmem:[#allocation7 + $0xb8] sm:$0xff]   ;;  %v3436_v53 = vld [vmem:[#allocation7 + $0xa0] sm:$0xff]   ;;  %v3438_v55 = vld [vmem:[#allocation7 + $0x90] sm:$0xff]  }
  0x6c   :  { %v2612_v45 = vld [vmem:[%s4211_s7 + $0x1] ss:$0 sm:$0xff]  ;;  %v3439_v56 = vld [vmem:[#allocation7 + $0x88] sm:$0xff]   ;;  %v3440_v57 = vld [vmem:[#allocation7 + $0x80] sm:$0xff]  }
  0x6d   :  { %v3437_v54 = vld [vmem:[#allocation7 + $0x98] sm:$0xff]   ;;  %v3442_v59 = vld [vmem:[#allocation7 + $0xf0] sm:$0xff]   ;;  %v3443_v60 = vld [vmem:[#allocation7 + $0xe8] sm:$0xff]  }
  0x6e   :  { %v3441_v58 = vld [vmem:[#allocation7 + $0xf8] sm:$0xff]   ;;  %v3444_v61 = vld [vmem:[#allocation7 + $0xe0] sm:$0xff]  }
  0x6f   :  { %v2622_v62 = vld [vmem:[%s4211_s7 + $0x2] ss:$0 sm:$0xff] }
  0x70   :  { %v3445_v7 = vld [vmem:[#allocation7 + $0xd8] sm:$0xff]  }
  0x71   :  { %v3578_v8 = vpop.eup %3577 }
  0x72   :  { %v3580_v9 = vpop.eup %3579  ;;  %215 = vperm.xlu0 %3416, %v3578_v8   ;;  %v3446_v8 = vld [vmem:[#allocation7 + $0xd0] sm:$0xff]  }
  0x73   :  { %v155_v11 = vpack.c.bf16 %v3580_v9, %v3580_v9  ;;  %v3447_v9 = vld [vmem:[#allocation7 + $0xc8] sm:$0xff]  }
  0x75   :  { %2998 = vmatmul.mubr.msk.bf16.vlgmr.msra.gmra.mxu1 %vm164_vm2, %v155_v11  ;;  %2992 = vmatmul.mubr.msk.bf16.vlgmr.msra.gmra.mxu0 %vm164_vm2, %v155_v11  ;;  %v3457_v11 = vld [vmem:[#allocation7 + $0x138] sm:$0xff]  }
  0x76   :  { %3002 = vmatpush3.bf16.msra.mxu0 %v3417_v10  ;;  %3017 = vmatprep.mubr.msk.bf16.mxu0 %vm3807_vm0, %v3805_v0  ;;  %v3448_v10 = vld [vmem:[#allocation7 + $0xc0] sm:$0xff]  }
  0x77   :  { %3003 = vmatprep.subr.bf16.mxu0 %v3805_v0  ;;  %3037 = vmatprep.mubr.msk.bf16.mxu1 %vm3807_vm0, %v3805_v0 }
  0x78   :  { %3022 = vmatpush3.bf16.msra.mxu1 %v3425_v19 }
  0x79   :  { %3023 = vmatprep.subr.bf16.mxu1 %v3805_v0 }
  0x7a   :  { %3004 = vmatpush3.bf16.msra.mxu0 %v3418_v12  ;;  %v3458_v12 = vld [vmem:[#allocation7 + $0x130] sm:$0xff]  }
  0x7b   :  { %3005 = vmatprep.subr.bf16.mxu0 %v3805_v0 }
  0x7c   :  { %3024 = vmatpush3.bf16.msra.mxu1 %v3426_v20 }
  0x7d   :  { %3025 = vmatprep.subr.bf16.mxu1 %v3805_v0 }
  0x7e   :  { %3006 = vmatpush3.bf16.msra.mxu0 %v3419_v13  ;;  %v3459_v13 = vld [vmem:[#allocation7 + $0x128] sm:$0xff]  }
  0x7f   :  { %3007 = vmatprep.subr.bf16.mxu0 %v3805_v0 }
  0x80   :  { %3026 = vmatpush3.bf16.msra.mxu1 %v3427_v21 }
  0x81   :  { %3027 = vmatprep.subr.bf16.mxu1 %v3805_v0 }
  0x82   :  { %3008 = vmatpush3.bf16.msra.mxu0 %v3420_v14  ;;  %v3460_v14 = vld [vmem:[#allocation7 + $0x120] sm:$0xff]  }
  0x83   :  { %3009 = vmatprep.subr.bf16.mxu0 %v3805_v0 }
  0x84   :  { %3028 = vmatpush3.bf16.msra.mxu1 %v3428_v37 }
  0x85   :  { %3029 = vmatprep.subr.bf16.mxu1 %v3805_v0 }
  0x86   :  { %3010 = vmatpush3.bf16.msra.mxu0 %v3421_v15  ;;  %v2632_v15 = vld [vmem:[%s4211_s7 + $0x3] ss:$0 sm:$0xff] }
  0x87   :  { %3011 = vmatprep.subr.bf16.mxu0 %v3805_v0 }
  0x88   :  { %3030 = vmatpush3.bf16.msra.mxu1 %v3429_v38 }
  0x89   :  { %3031 = vmatprep.subr.bf16.mxu1 %v3805_v0 }
  0x8a   :  { %3012 = vmatpush3.bf16.msra.mxu0 %v3422_v16 }
  0x8b   :  { %3013 = vmatprep.subr.bf16.mxu0 %v3805_v0 }
  0x8c   :  { %3032 = vmatpush3.bf16.msra.mxu1 %v3430_v39  ;;  %v3461_v39 = vld [vmem:[#allocation7 + $0x118] sm:$0xff]  }
  0x8d   :  { %3033 = vmatprep.subr.bf16.mxu1 %v3805_v0 }
  0x8e   :  { %3014 = vmatpush3.bf16.msra.mxu0 %v3423_v17 }
  0x8f   :  { %3015 = vmatprep.subr.bf16.mxu0 %v3805_v0 }
  0x90   :  { %3034 = vmatpush3.bf16.msra.mxu1 %v3431_v40  ;;  %v3462_v40 = vld [vmem:[#allocation7 + $0x110] sm:$0xff]  }
  0x91   :  { %3035 = vmatprep.subr.bf16.mxu1 %v3805_v0 }
  0x92   :  { %3016 = vmatpush3.bf16.msra.mxu0 %v3424_v18 }
  0x93   :  { %3041 = vmatprep.subr.bf16.mxu0 %v3805_v0 }
  0x94   :  { %3036 = vmatpush3.bf16.msra.mxu1 %v3432_v41  ;;  %v3463_v41 = vld [vmem:[#allocation7 + $0x108] sm:$0xff]  }
  0x95   :  { %3061 = vmatprep.subr.bf16.mxu1 %v3805_v0 }
  0xed   :  { %v3951_v24 = vpop.permute.xlu0 %215 }
  0xee   :  { %v224_v25 = vmul.f32 %v2606_v22, %v3951_v24  ;;  %v3449_v22 = vld [vmem:[#allocation13 + $0x38] sm:$0xff]  }
  0xf0   :  { %v232_v26 = vadd.f32 %v2607_v23, %v224_v25  ;;  %v2608_v25 = vld [vmem:[%s4215_s11] ss:$0 sm:$0xff] }
  0xf2   :  { %3581 = vtanh.f32 %v232_v26  ;;  %v3450_v26 = vld [vmem:[#allocation13 + $0x30] sm:$0xff]  }
  0xff   :  { %v3582_v27 = vpop.eup %3581 }
 0x100   :  { %v294_v28 = vpack.c.bf16 %v3582_v27, %v3582_v27  ;;  %v241_v27 = vmul.f32 %v2608_v25, %v3951_v24  ;;  %v3454_v24 = vld [vmem:[#allocation13 + $0x10] sm:$0xff]  }
 0x102   :  { %3018 = vmatmul.mubr.bf16.vlgmr.msra.gmra.mxu0 %v294_v28  ;;  %v3451_v28 = vld [vmem:[#allocation13 + $0x28] sm:$0xff]  }
 0x103   :  { %3057 = vmatprep.mubr.msk.bf16.mxu0 %vm3807_vm0, %v3805_v0  ;;  %3042 = vmatpush3.bf16.msra.mxu0 %v3433_v42  ;;  %v3464_v42 = vld [vmem:[#allocation7 + $0x100] sm:$0xff]  }
 0x104   :  { %3043 = vmatprep.subr.bf16.mxu0 %v3805_v0 }
 0x107   :  { %3044 = vmatpush3.bf16.msra.mxu0 %v3434_v43  ;;  %v2642_v43 = vld [vmem:[%s4211_s7 + $0x4] ss:$0 sm:$0xff] }
 0x108   :  { %3045 = vmatprep.subr.bf16.mxu0 %v3805_v0 }
 0x10b   :  { %3046 = vmatpush3.bf16.msra.mxu0 %v3435_v44 }
 0x10c   :  { %3047 = vmatprep.subr.bf16.mxu0 %v3805_v0 }
 0x10f   :  { %3048 = vmatpush3.bf16.msra.mxu0 %v3436_v53  ;;  %v3467_v53 = vld [vmem:[#allocation13 + $0x68] sm:$0xff]  }
 0x110   :  { %3049 = vmatprep.subr.bf16.mxu0 %v3805_v0 }
 0x113   :  { %3050 = vmatpush3.bf16.msra.mxu0 %v3437_v54  ;;  %v3468_v54 = vld [vmem:[#allocation13 + $0x60] sm:$0xff]  }
 0x114   :  { %3051 = vmatprep.subr.bf16.mxu0 %v3805_v0 }
 0x117   :  { %3052 = vmatpush3.bf16.msra.mxu0 %v3438_v55  ;;  %v2662_v55 = vld [vmem:[%s4217_s13 + $0x1] ss:$0 sm:$0xff] }
 0x118   :  { %3053 = vmatprep.subr.bf16.mxu0 %v3805_v0 }
 0x11b   :  { %3054 = vmatpush3.bf16.msra.mxu0 %v3439_v56 }
 0x11c   :  { %3055 = vmatprep.subr.bf16.mxu0 %v3805_v0 }
 0x11f   :  { %3056 = vmatpush3.bf16.msra.mxu0 %v3440_v57  ;;  %v3469_v57 = vld [vmem:[#allocation13 + $0x58] sm:$0xff]  }
 0x120   :  { %3081 = vmatprep.subr.bf16.mxu0 %v3805_v0 }
 0x135   :  { %v3956_v29 = vpop.f32.mrf.mxu1  ;;  %v3958_v30 = vpop.f32.mrf.mxu0 }
 0x137   :  { %v2993_v31 = vpop.f32.mrf.mxu0  ;;  %v2999_v32 = vpop.f32.mrf.mxu1 }
 0x138   :  { %v280_v31 = vadd.f32 %v3956_v29, %v241_v27  ;;  %v2610_v32 = vld [vmem:[%s4217_s13] ss:$0 sm:$0xff]  ;;  %v3455_v29 = vld [vmem:[#allocation13 + $0x8] sm:$0xff]  }
 0x139   :  { %v209_v33 = vpop.f32.mrf.mxu0  ;;  %v282_v34 = vpop.f32.mrf.mxu1 }
 0x13a   :  { %v3452_v33 = vld [vmem:[#allocation13 + $0x20] sm:$0xff]   ;;  %v292_v34 = vadd.f32 %v2610_v32, %v280_v31 }
 0x13b   :  { %v2994_v35 = vpop.f32.mrf.mxu0  ;;  %v3000_v36 = vpop.f32.mrf.mxu1  ;;  %v3482_v32 = vld [vmem:[#allocation4 + $0x30] sm:$0xff]  }
 0x13c   :  { %v3453_v35 = vld [vmem:[#allocation13 + $0x18] sm:$0xff]   ;;  %v3456_v36 = vld [vmem:[#allocation13] sm:$0xff]  }
 0x1c2   :  { %v401_v46 = vpop.f32.mrf.mxu0 }
 0x1c3   :  { %v402_v47 = vadd.f32 %v2612_v45, %v401_v46 }
 0x1c4   :  { %v3019_v48 = vpop.f32.mrf.mxu0 }
 0x1c5   :  { %3583 = vtanh.f32 %v402_v47 }
 0x1c6   :  { %v404_v49 = vpop.f32.mrf.mxu0 }
 0x1c8   :  { %v3020_v50 = vpop.f32.mrf.mxu0 }
 0x1c9   :  { %v3465_v50 = vld [vmem:[#allocation13 + $0x78] sm:$0xff]  }
 0x1d2   :  { %v3584_v51 = vpop.eup %3583 }
 0x1d3   :  { %v408_v52 = vpack.c.bf16 %v3584_v51, %v3584_v51 }
 0x1d5   :  { %3038 = vmatmul.mubr.bf16.vlgmr.msra.gmra.mxu1 %v408_v52  ;;  %v3466_v52 = vld [vmem:[#allocation13 + $0x70] sm:$0xff]  }
 0x1d6   :  { %3077 = vmatprep.mubr.msk.bf16.mxu1 %vm3807_vm0, %v3805_v0  ;;  %3062 = vmatpush3.bf16.msra.mxu1 %v3441_v58 }
 0x1d7   :  { %3063 = vmatprep.subr.bf16.mxu1 %v3805_v0 }
 0x1da   :  { %3064 = vmatpush3.bf16.msra.mxu1 %v3442_v59 }
 0x1db   :  { %3065 = vmatprep.subr.bf16.mxu1 %v3805_v0 }
 0x1de   :  { %3066 = vmatpush3.bf16.msra.mxu1 %v3443_v60 }
 0x1df   :  { %3067 = vmatprep.subr.bf16.mxu1 %v3805_v0 }
 0x1e2   :  { %3068 = vmatpush3.bf16.msra.mxu1 %v3444_v61  ;;  %v3470_v61 = vld [vmem:[#allocation13 + $0x50] sm:$0xff]  }
 0x1e3   :  { %3069 = vmatprep.subr.bf16.mxu1 %v3805_v0 }
 0x1e6   :  { %3070 = vmatpush3.bf16.msra.mxu1 %v3445_v7  ;;  %v3476_v7 = vld [vmem:[#allocation13 + $0xa0] sm:$0xff]  }
 0x1e7   :  { %3071 = vmatprep.subr.bf16.mxu1 %v3805_v0 }
 0x1ea   :  { %3072 = vmatpush3.bf16.msra.mxu1 %v3446_v8  ;;  %v3477_v8 = vld [vmem:[#allocation13 + $0x98] sm:$0xff]  }
 0x1eb   :  { %3073 = vmatprep.subr.bf16.mxu1 %v3805_v0 }
 0x1ee   :  { %3074 = vmatpush3.bf16.msra.mxu1 %v3447_v9  ;;  %v3478_v9 = vld [vmem:[#allocation13 + $0x90] sm:$0xff]  }
 0x1ef   :  { %3075 = vmatprep.subr.bf16.mxu1 %v3805_v0 }
 0x1f2   :  { %3076 = vmatpush3.bf16.msra.mxu1 %v3448_v10  ;;  %v3479_v10 = vld [vmem:[#allocation13 + $0x88] sm:$0xff]  }
 0x1f3   :  { %3101 = vmatprep.subr.bf16.mxu1 %v3805_v0 }
 0x295   :  { %v516_v63 = vpop.f32.mrf.mxu1 }
 0x296   :  { %v517_v1 = vadd.f32 %v2622_v62, %v516_v63  ;;  %v3471_v63 = vld [vmem:[#allocation13 + $0x48] sm:$0xff]  }
 0x297   :  { %v3039_v2 = vpop.f32.mrf.mxu1 }
 0x298   :  { %3585 = vtanh.f32 %v517_v1  ;;  %v3472_v1 = vld [vmem:[#allocation13 + $0x40] sm:$0xff]  }
 0x299   :  { %v519_v3 = vpop.f32.mrf.mxu1 }
 0x29b   :  { %v3040_v4 = vpop.f32.mrf.mxu1 }
 0x29c   :  { %v3473_v4 = vld [vmem:[#allocation13 + $0xb8] sm:$0xff]  }
 0x2a5   :  { %v3586_v5 = vpop.eup %3585 }
 0x2a6   :  { %v523_v6 = vpack.c.bf16 %v3586_v5, %v3586_v5  ;;  %v3474_v5 = vld [vmem:[#allocation13 + $0xb0] sm:$0xff]  }
 0x2a8   :  { %3058 = vmatmul.mubr.bf16.vlgmr.msra.gmra.mxu0 %v523_v6  ;;  %v3475_v6 = vld [vmem:[#allocation13 + $0xa8] sm:$0xff]  }
 0x2a9   :  { %3097 = vmatprep.mubr.msk.bf16.mxu0 %vm3807_vm0, %v3805_v0  ;;  %3082 = vmatpush3.bf16.msra.mxu0 %v3457_v11  ;;  %v3480_v11 = vld [vmem:[#allocation13 + $0x80] sm:$0xff]  }
 0x2aa   :  { %3083 = vmatprep.subr.bf16.mxu0 %v3805_v0 }
 0x2ad   :  { %3084 = vmatpush3.bf16.msra.mxu0 %v3458_v12  ;;  %v3489_v12 = vld [vmem:[#allocation13 + $0xf8] sm:$0xff]  }
 0x2ae   :  { %3085 = vmatprep.subr.bf16.mxu0 %v3805_v0 }
 0x2b1   :  { %3086 = vmatpush3.bf16.msra.mxu0 %v3459_v13  ;;  %v3490_v13 = vld [vmem:[#allocation13 + $0xf0] sm:$0xff]  }
 0x2b2   :  { %3087 = vmatprep.subr.bf16.mxu0 %v3805_v0 }
 0x2b5   :  { %3088 = vmatpush3.bf16.msra.mxu0 %v3460_v14  ;;  %v3491_v14 = vld [vmem:[#allocation13 + $0xe8] sm:$0xff]  }
 0x2b6   :  { %3089 = vmatprep.subr.bf16.mxu0 %v3805_v0 }
 0x2b9   :  { %3090 = vmatpush3.bf16.msra.mxu0 %v3461_v39 }
 0x2ba   :  { %3091 = vmatprep.subr.bf16.mxu0 %v3805_v0 }
 0x2bd   :  { %3092 = vmatpush3.bf16.msra.mxu0 %v3462_v40  ;;  %v3493_v40 = vld [vmem:[#allocation13 + $0xd8] sm:$0xff]  }
 0x2be   :  { %3093 = vmatprep.subr.bf16.mxu0 %v3805_v0 }
 0x2c1   :  { %3094 = vmatpush3.bf16.msra.mxu0 %v3463_v41  ;;  %v3494_v41 = vld [vmem:[#allocation13 + $0xd0] sm:$0xff]  }
 0x2c2   :  { %3095 = vmatprep.subr.bf16.mxu0 %v3805_v0 }
 0x2c5   :  { %3096 = vmatpush3.bf16.msra.mxu0 %v3464_v42  ;;  %v3495_v42 = vld [vmem:[#allocation13 + $0xc8] sm:$0xff]  }
 0x2c6   :  { %3121 = vmatprep.subr.bf16.mxu0 %v3805_v0 }
 0x368   :  { %v631_v16 = vpop.f32.mrf.mxu0 }
 0x369   :  { %v632_v17 = vadd.f32 %v2632_v15, %v631_v16  ;;  %v3492_v15 = vld [vmem:[#allocation13 + $0xe0] sm:$0xff]  }
 0x36a   :  { %v3059_v18 = vpop.f32.mrf.mxu0 }
 0x36b   :  { %3587 = vtanh.f32 %v632_v17 }
 0x36c   :  { %v634_v19 = vpop.f32.mrf.mxu0  ;;  %3589 = vtanh.f32 %v292_v34  ;;  %v2604_v34 = vld [vmem:[%s4208_s4] ss:$0 sm:$0xff] }
 0x36e   :  { %v3060_v20 = vpop.f32.mrf.mxu0 }
 0x36f   :  { %v2672_v20 = vld [vmem:[%s4217_s13 + $0x2] ss:$0 sm:$0xff] }
 0x378   :  { %v3588_v21 = vpop.eup %3587 }
 0x379   :  { %v638_v23 = vpack.c.bf16 %v3588_v21, %v3588_v21  ;;  %v3590_v37 = vpop.eup %3589 }
 0x37a   :  { %v869_v38 = vpack.c.bf16 %v3590_v37, %v3590_v37  ;;  %v3487_v37 = vld [vmem:[#allocation4 + $0x8] sm:$0xff]  }
 0x37b   :  { %3078 = vmatmul.mubr.bf16.vlgmr.msra.gmra.mxu1 %v638_v23 }
 0x37c   :  { %3102 = vmatpush3.bf16.msra.mxu1 %v3449_v22  ;;  %3117 = vmatprep.mubr.msk.bf16.mxu1 %vm3807_vm0, %v3805_v0 }
 0x37d   :  { %3103 = vmatprep.subr.bf16.mxu1 %v3805_v0 }
 0x380   :  { %3104 = vmatpush3.bf16.msra.mxu1 %v3450_v26 }
 0x381   :  { %3105 = vmatprep.subr.bf16.mxu1 %v3805_v0 }
 0x384   :  { %3106 = vmatpush3.bf16.msra.mxu1 %v3451_v28  ;;  %v3481_v28 = vld [vmem:[#allocation4 + $0x38] sm:$0xff]  }
 0x385   :  { %3107 = vmatprep.subr.bf16.mxu1 %v3805_v0 }
 0x388   :  { %3108 = vmatpush3.bf16.msra.mxu1 %v3452_v33  ;;  %v3483_v33 = vld [vmem:[#allocation4 + $0x28] sm:$0xff]  }
 0x389   :  { %3109 = vmatprep.subr.bf16.mxu1 %v3805_v0 }
 0x38c   :  { %3110 = vmatpush3.bf16.msra.mxu1 %v3453_v35  ;;  %v3484_v35 = vld [vmem:[#allocation4 + $0x20] sm:$0xff]  }
 0x38d   :  { %3111 = vmatprep.subr.bf16.mxu1 %v3805_v0 }
 0x390   :  { %3112 = vmatpush3.bf16.msra.mxu1 %v3454_v24  ;;  %v207_v24 = vadd.f32 %v2604_v34, %v3958_v30  ;;  %v3518_v34 = vld [vmem:[#allocation4 + $0xd0] sm:$0xff]  }
 0x391   :  { %3113 = vmatprep.subr.bf16.mxu1 %v3805_v0 }
 0x394   :  { %3114 = vmatpush3.bf16.msra.mxu1 %v3455_v29  ;;  %v3485_v29 = vld [vmem:[#allocation4 + $0x18] sm:$0xff]  }
 0x395   :  { %3115 = vmatprep.subr.bf16.mxu1 %v3805_v0 }
 0x398   :  { %3116 = vmatpush3.bf16.msra.mxu1 %v3456_v36  ;;  %v3486_v36 = vld [vmem:[#allocation4 + $0x10] sm:$0xff]  }
 0x399   :  { %3141 = vmatprep.subr.bf16.mxu1 %v3805_v0 }
 0x39b   :  { %3118 = vmatmul.mubr.bf16.vlgmr.msra.gmra.mxu1 %v869_v38  ;;  %v3488_v38 = vld [vmem:[#allocation4] sm:$0xff]  }
 0x39c   :  { %3157 = vmatprep.mubr.msk.bf16.mxu1 %vm3807_vm0, %v3805_v0  ;;  %3142 = vmatpush3.bf16.msra.mxu1 %v3473_v4 }
 0x39d   :  { %3143 = vmatprep.subr.bf16.mxu1 %v3805_v0 }
 0x3a0   :  { %3144 = vmatpush3.bf16.msra.mxu1 %v3474_v5  ;;  %v3505_v5 = vld [vmem:[#allocation4 + $0xb8] sm:$0xff]  }
 0x3a1   :  { %3145 = vmatprep.subr.bf16.mxu1 %v3805_v0 }
 0x3a4   :  { %3146 = vmatpush3.bf16.msra.mxu1 %v3475_v6  ;;  %v3506_v6 = vld [vmem:[#allocation4 + $0xb0] sm:$0xff]  }
 0x3a5   :  { %3147 = vmatprep.subr.bf16.mxu1 %v3805_v0 }
 0x3a8   :  { %3148 = vmatpush3.bf16.msra.mxu1 %v3476_v7  ;;  %v3507_v7 = vld [vmem:[#allocation4 + $0xa8] sm:$0xff]  }
 0x3a9   :  { %3149 = vmatprep.subr.bf16.mxu1 %v3805_v0 }
 0x3ac   :  { %3150 = vmatpush3.bf16.msra.mxu1 %v3477_v8  ;;  %v3508_v8 = vld [vmem:[#allocation4 + $0xa0] sm:$0xff]  }
 0x3ad   :  { %3151 = vmatprep.subr.bf16.mxu1 %v3805_v0 }
 0x3b0   :  { %3152 = vmatpush3.bf16.msra.mxu1 %v3478_v9  ;;  %v3509_v9 = vld [vmem:[#allocation4 + $0x98] sm:$0xff]  }
 0x3b1   :  { %3153 = vmatprep.subr.bf16.mxu1 %v3805_v0 }
 0x3b4   :  { %3154 = vmatpush3.bf16.msra.mxu1 %v3479_v10  ;;  %v3510_v10 = vld [vmem:[#allocation4 + $0x90] sm:$0xff]  }
 0x3b5   :  { %3155 = vmatprep.subr.bf16.mxu1 %v3805_v0 }
 0x3b8   :  { %3156 = vmatpush3.bf16.msra.mxu1 %v3480_v11  ;;  %v3511_v11 = vld [vmem:[#allocation4 + $0x88] sm:$0xff]  }
 0x3b9   :  { %3181 = vmatprep.subr.bf16.mxu1 %v3805_v0 }
 0x43b   :  { %v746_v44 = vpop.f32.mrf.mxu1 }
 0x43c   :  { %v747_v45 = vadd.f32 %v2642_v43, %v746_v44  ;;  %v3496_v43 = vld [vmem:[#allocation13 + $0xc0] sm:$0xff]   ;;  %v2682_v44 = vld [vmem:[%s4217_s13 + $0x3] ss:$0 sm:$0xff] }
 0x43d   :  { %v3079_v46 = vpop.f32.mrf.mxu1 }
 0x43e   :  { %3591 = vtanh.f32 %v747_v45 }
 0x43f   :  { %v749_v47 = vpop.f32.mrf.mxu1 }
 0x441   :  { %v3080_v48 = vpop.f32.mrf.mxu1 }
 0x44b   :  { %v3592_v49 = vpop.eup %3591 }
 0x44c   :  { %v753_v51 = vpack.c.bf16 %v3592_v49, %v3592_v49 }
 0x44e   :  { %3098 = vmatmul.mubr.bf16.vlgmr.msra.gmra.mxu0 %v753_v51  ;;  %v3497_v51 = vld [vmem:[#allocation4 + $0x78] sm:$0xff]  }
 0x44f   :  { %3122 = vmatpush3.bf16.msra.mxu0 %v3465_v50  ;;  %3137 = vmatprep.mubr.msk.bf16.mxu0 %vm3807_vm0, %v3805_v0 }
 0x450   :  { %3123 = vmatprep.subr.bf16.mxu0 %v3805_v0 }
 0x453   :  { %3124 = vmatpush3.bf16.msra.mxu0 %v3466_v52 }
 0x454   :  { %3125 = vmatprep.subr.bf16.mxu0 %v3805_v0 }
 0x457   :  { %3126 = vmatpush3.bf16.msra.mxu0 %v3467_v53  ;;  %v3498_v53 = vld [vmem:[#allocation4 + $0x70] sm:$0xff]  }
 0x458   :  { %3127 = vmatprep.subr.bf16.mxu0 %v3805_v0 }
 0x45b   :  { %v976_v56 = vpop.f32.mrf.mxu1  ;;  %3128 = vmatpush3.bf16.msra.mxu0 %v3468_v54  ;;  %v3499_v54 = vld [vmem:[#allocation4 + $0x68] sm:$0xff]  }
 0x45c   :  { %v977_v58 = vadd.f32 %v2662_v55, %v976_v56  ;;  %3129 = vmatprep.subr.bf16.mxu0 %v3805_v0  ;;  %v3500_v55 = vld [vmem:[#allocation4 + $0x60] sm:$0xff]   ;;  %v2702_v56 = vld [vmem:[%s4208_s4 + $0x1] ss:$0 sm:$0xff] }
 0x45d   :  { %v3119_v59 = vpop.f32.mrf.mxu1 }
 0x45e   :  { %3593 = vtanh.f32 %v977_v58  ;;  %v3501_v58 = vld [vmem:[#allocation4 + $0x58] sm:$0xff]  }
 0x45f   :  { %v979_v60 = vpop.f32.mrf.mxu1  ;;  %3130 = vmatpush3.bf16.msra.mxu0 %v3469_v57 }
 0x460   :  { %3131 = vmatprep.subr.bf16.mxu0 %v3805_v0 }
 0x461   :  { %v3120_v62 = vpop.f32.mrf.mxu1 }
 0x462   :  { %v3502_v62 = vld [vmem:[#allocation4 + $0x50] sm:$0xff]  }
 0x463   :  { %3132 = vmatpush3.bf16.msra.mxu0 %v3470_v61 }
 0x464   :  { %3133 = vmatprep.subr.bf16.mxu0 %v3805_v0 }
 0x467   :  { %3134 = vmatpush3.bf16.msra.mxu0 %v3471_v63 }
 0x468   :  { %3135 = vmatprep.subr.bf16.mxu0 %v3805_v0 }
 0x46b   :  { %v3594_v2 = vpop.eup %3593  ;;  %3136 = vmatpush3.bf16.msra.mxu0 %v3472_v1  ;;  %v3503_v1 = vld [vmem:[#allocation4 + $0x48] sm:$0xff]  }
 0x46c   :  { %v983_v3 = vpack.c.bf16 %v3594_v2, %v3594_v2  ;;  %3161 = vmatprep.subr.bf16.mxu0 %v3805_v0  ;;  %v3504_v2 = vld [vmem:[#allocation4 + $0x40] sm:$0xff]  }
 0x46e   :  { %3138 = vmatmul.mubr.bf16.vlgmr.msra.gmra.mxu0 %v983_v3 }
 0x46f   :  { %3177 = vmatprep.mubr.msk.bf16.mxu0 %vm3807_vm0, %v3805_v0  ;;  %3162 = vmatpush3.bf16.msra.mxu0 %v3489_v12  ;;  %v3512_v12 = vld [vmem:[#allocation4 + $0x80] sm:$0xff]  }
 0x470   :  { %3163 = vmatprep.subr.bf16.mxu0 %v3805_v0 }
 0x473   :  { %3164 = vmatpush3.bf16.msra.mxu0 %v3490_v13  ;;  %v3513_v13 = vld [vmem:[#allocation4 + $0xf8] sm:$0xff]  }
 0x474   :  { %3165 = vmatprep.subr.bf16.mxu0 %v3805_v0 }
 0x477   :  { %3166 = vmatpush3.bf16.msra.mxu0 %v3491_v14  ;;  %v3514_v14 = vld [vmem:[#allocation4 + $0xf0] sm:$0xff]  }
 0x478   :  { %3167 = vmatprep.subr.bf16.mxu0 %v3805_v0 }
 0x47b   :  { %3168 = vmatpush3.bf16.msra.mxu0 %v3492_v15  ;;  %v3515_v15 = vld [vmem:[#allocation4 + $0xe8] sm:$0xff]  }
 0x47c   :  { %3169 = vmatprep.subr.bf16.mxu0 %v3805_v0 }
 0x47f   :  { %3170 = vmatpush3.bf16.msra.mxu0 %v3493_v40 }
 0x480   :  { %3171 = vmatprep.subr.bf16.mxu0 %v3805_v0 }
 0x483   :  { %3172 = vmatpush3.bf16.msra.mxu0 %v3494_v41 }
 0x484   :  { %3173 = vmatprep.subr.bf16.mxu0 %v3805_v0 }
 0x487   :  { %3174 = vmatpush3.bf16.msra.mxu0 %v3495_v42 }
 0x488   :  { %3175 = vmatprep.subr.bf16.mxu0 %v3805_v0 }
 0x48b   :  { %3176 = vmatpush3.bf16.msra.mxu0 %v3496_v43 }
 0x48c   :  { %3201 = vmatprep.subr.bf16.mxu0 %v3805_v0 }
 0x50e   :  { %v4052_v16 = vpop.f32.mrf.mxu0 }
 0x510   :  { %v3099_v17 = vpop.f32.mrf.mxu0 }
 0x512   :  { %v864_v18 = vpop.f32.mrf.mxu0 }
 0x514   :  { %v3100_v19 = vpop.f32.mrf.mxu0 }
 0x52e   :  { %v1091_v21 = vpop.f32.mrf.mxu0 }
 0x52f   :  { %v1092_v22 = vadd.f32 %v2672_v20, %v1091_v21  ;;  %v2712_v21 = vld [vmem:[%s4208_s4 + $0x2] ss:$0 sm:$0xff] }
 0x530   :  { %v3139_v23 = vpop.f32.mrf.mxu0 }
 0x531   :  { %3595 = vtanh.f32 %v1092_v22 }
 0x532   :  { %v1094_v25 = vpop.f32.mrf.mxu0  ;;  %3597 = vtanh.f32 %v207_v24  ;;  %v3520_v24 = vld [vmem:[#allocation4 + $0xc0] sm:$0xff]  }
 0x534   :  { %v3140_v26 = vpop.f32.mrf.mxu0 }
 0x53e   :  { %v3596_v27 = vpop.eup %3595 }
 0x53f   :  { %v1098_v31 = vpack.c.bf16 %v3596_v27, %v3596_v27  ;;  %v3598_v30 = vpop.eup %3597 }
 0x540   :  { %v1328_v39 = vpack.c.bf16 %v3598_v30, %v3598_v30 }
 0x541   :  { %3158 = vmatmul.mubr.bf16.vlgmr.msra.gmra.mxu1 %v1098_v31 }
 0x542   :  { %3182 = vmatpush3.bf16.msra.mxu1 %v3481_v28  ;;  %3197 = vmatprep.mubr.msk.bf16.mxu1 %vm3807_vm0, %v3805_v0 }
 0x543   :  { %3183 = vmatprep.subr.bf16.mxu1 %v3805_v0 }
 0x546   :  { %3184 = vmatpush3.bf16.msra.mxu1 %v3482_v32  ;;  %v3516_v32 = vld [vmem:[#allocation4 + $0xe0] sm:$0xff]  }
 0x547   :  { %3185 = vmatprep.subr.bf16.mxu1 %v3805_v0 }
 0x54a   :  { %3186 = vmatpush3.bf16.msra.mxu1 %v3483_v33  ;;  %v3517_v33 = vld [vmem:[#allocation4 + $0xd8] sm:$0xff]  }
 0x54b   :  { %3187 = vmatprep.subr.bf16.mxu1 %v3805_v0 }
 0x54e   :  { %3188 = vmatpush3.bf16.msra.mxu1 %v3484_v35  ;;  %v3519_v35 = vld [vmem:[#allocation4 + $0xc8] sm:$0xff]  }
 0x54f   :  { %3189 = vmatprep.subr.bf16.mxu1 %v3805_v0 }
 0x552   :  { %3190 = vmatpush3.bf16.msra.mxu1 %v3485_v29  ;;  %v3521_v29 = vld [vmem:[#allocation4 + $0x138] sm:$0xff]  }
 0x553   :  { %3191 = vmatprep.subr.bf16.mxu1 %v3805_v0 }
 0x556   :  { %3192 = vmatpush3.bf16.msra.mxu1 %v3486_v36  ;;  %v3522_v36 = vld [vmem:[#allocation4 + $0x130] sm:$0xff]  }
 0x557   :  { %3193 = vmatprep.subr.bf16.mxu1 %v3805_v0 }
 0x55a   :  { %3194 = vmatpush3.bf16.msra.mxu1 %v3487_v37  ;;  %v3523_v37 = vld [vmem:[#allocation4 + $0x128] sm:$0xff]  }
 0x55b   :  { %3195 = vmatprep.subr.bf16.mxu1 %v3805_v0 }
 0x55e   :  { %3196 = vmatpush3.bf16.msra.mxu1 %v3488_v38  ;;  %v2722_v38 = vld [vmem:[%s4208_s4 + $0x3] ss:$0 sm:$0xff] }
 0x55f   :  { %3221 = vmatprep.subr.bf16.mxu1 %v3805_v0 }
 0x561   :  { %3198 = vmatmul.mubr.bf16.vlgmr.msra.gmra.mxu1 %v1328_v39 }
 0x562   :  { %3237 = vmatprep.mubr.msk.bf16.mxu1 %vm3807_vm0, %v3805_v0  ;;  %3222 = vmatpush3.bf16.msra.mxu1 %v3505_v5  ;;  %v3539_v5 = vld [vmem:[#allocation9 + $0x68] sm:$0xff]  }
 0x563   :  { %3223 = vmatprep.subr.bf16.mxu1 %v3805_v0 }
 0x566   :  { %3224 = vmatpush3.bf16.msra.mxu1 %v3506_v6  ;;  %v2742_v6 = vld [vmem:[%s4208_s4 + $0x5] ss:$0 sm:$0xff] }
 0x567   :  { %3225 = vmatprep.subr.bf16.mxu1 %v3805_v0 }
 0x56a   :  { %3226 = vmatpush3.bf16.msra.mxu1 %v3507_v7 }
 0x56b   :  { %3227 = vmatprep.subr.bf16.mxu1 %v3805_v0 }
 0x56e   :  { %3228 = vmatpush3.bf16.msra.mxu1 %v3508_v8 }
 0x56f   :  { %3229 = vmatprep.subr.bf16.mxu1 %v3805_v0 }
 0x572   :  { %3230 = vmatpush3.bf16.msra.mxu1 %v3509_v9 }
 0x573   :  { %3231 = vmatprep.subr.bf16.mxu1 %v3805_v0 }
 0x576   :  { %3232 = vmatpush3.bf16.msra.mxu1 %v3510_v10 }
 0x577   :  { %3233 = vmatprep.subr.bf16.mxu1 %v3805_v0 }
 0x57a   :  { %3234 = vmatpush3.bf16.msra.mxu1 %v3511_v11 }
 0x57b   :  { %3235 = vmatprep.subr.bf16.mxu1 %v3805_v0 }
 0x57e   :  { %3236 = vmatpush3.bf16.msra.mxu1 %v3512_v12 }
 0x57f   :  { %3261 = vmatprep.subr.bf16.mxu1 %v3805_v0 }
 0x601   :  { %v1206_v45 = vpop.f32.mrf.mxu1 }
 0x602   :  { %v1207_v46 = vadd.f32 %v2682_v44, %v1206_v45  ;;  %v3524_v45 = vld [vmem:[#allocation4 + $0x120] sm:$0xff]  }
 0x603   :  { %v3159_v47 = vpop.f32.mrf.mxu1 }
 0x604   :  { %3599 = vtanh.f32 %v1207_v46  ;;  %v3525_v46 = vld [vmem:[#allocation4 + $0x118] sm:$0xff]   ;;  %v3526_v47 = vld [vmem:[#allocation4 + $0x110] sm:$0xff]  }
 0x605   :  { %v1209_v48 = vpop.f32.mrf.mxu1 }
 0x606   :  { %v3527_v48 = vld [vmem:[#allocation4 + $0x108] sm:$0xff]  }
 0x607   :  { %v3160_v49 = vpop.f32.mrf.mxu1 }
 0x608   :  { %v3528_v49 = vld [vmem:[#allocation4 + $0x100] sm:$0xff]  }
 0x611   :  { %v3600_v50 = vpop.eup %3599 }
 0x612   :  { %v1213_v52 = vpack.c.bf16 %v3600_v50, %v3600_v50  ;;  %v3529_v50 = vld [vmem:[#allocation9 + $0x38] sm:$0xff]  }
 0x614   :  { %3178 = vmatmul.mubr.bf16.vlgmr.msra.gmra.mxu0 %v1213_v52  ;;  %v3531_v52 = vld [vmem:[#allocation9 + $0x28] sm:$0xff]  }
 0x615   :  { %3202 = vmatpush3.bf16.msra.mxu0 %v3497_v51  ;;  %3217 = vmatprep.mubr.msk.bf16.mxu0 %vm3807_vm0, %v3805_v0  ;;  %v3530_v51 = vld [vmem:[#allocation9 + $0x30] sm:$0xff]  }
 0x616   :  { %3203 = vmatprep.subr.bf16.mxu0 %v3805_v0 }
 0x619   :  { %3204 = vmatpush3.bf16.msra.mxu0 %v3498_v53  ;;  %v2732_v53 = vld [vmem:[%s4208_s4 + $0x4] ss:$0 sm:$0xff] }
 0x61a   :  { %3205 = vmatprep.subr.bf16.mxu0 %v3805_v0 }
 0x61d   :  { %3206 = vmatpush3.bf16.msra.mxu0 %v3499_v54 }
 0x61e   :  { %3207 = vmatprep.subr.bf16.mxu0 %v3805_v0 }
 0x621   :  { %v1435_v57 = vpop.f32.mrf.mxu1  ;;  %3208 = vmatpush3.bf16.msra.mxu0 %v3500_v55 }
 0x622   :  { %v1436_v59 = vadd.f32 %v2702_v56, %v1435_v57  ;;  %3209 = vmatprep.subr.bf16.mxu0 %v3805_v0 }
 0x623   :  { %v3199_v60 = vpop.f32.mrf.mxu1 }
 0x624   :  { %3601 = vtanh.f32 %v1436_v59 }
 0x625   :  { %v1438_v61 = vpop.f32.mrf.mxu1  ;;  %3210 = vmatpush3.bf16.msra.mxu0 %v3501_v58 }
 0x626   :  { %3211 = vmatprep.subr.bf16.mxu0 %v3805_v0  ;;  %v3532_v61 = vld [vmem:[#allocation9 + $0x20] sm:$0xff]  }
 0x627   :  { %v3200_v63 = vpop.f32.mrf.mxu1 }
 0x628   :  { %v3534_v63 = vld [vmem:[#allocation9 + $0x10] sm:$0xff]  }
 0x629   :  { %3212 = vmatpush3.bf16.msra.mxu0 %v3502_v62  ;;  %v3533_v62 = vld [vmem:[#allocation9 + $0x18] sm:$0xff]  }
 0x62a   :  { %3213 = vmatprep.subr.bf16.mxu0 %v3805_v0 }
 0x62d   :  { %3214 = vmatpush3.bf16.msra.mxu0 %v3503_v1  ;;  %v3535_v1 = vld [vmem:[#allocation9 + $0x8] sm:$0xff]  }
 0x62e   :  { %3215 = vmatprep.subr.bf16.mxu0 %v3805_v0 }
 0x631   :  { %v3602_v3 = vpop.eup %3601  ;;  %3216 = vmatpush3.bf16.msra.mxu0 %v3504_v2  ;;  %v3536_v2 = vld [vmem:[#allocation9] sm:$0xff]  }
 0x632   :  { %v1442_v4 = vpack.c.bf16 %v3602_v3, %v3602_v3  ;;  %3241 = vmatprep.subr.bf16.mxu0 %v3805_v0  ;;  %v3537_v3 = vld [vmem:[#allocation9 + $0x78] sm:$0xff]  }
 0x634   :  { %3218 = vmatmul.mubr.bf16.vlgmr.msra.gmra.mxu0 %v1442_v4  ;;  %v3538_v4 = vld [vmem:[#allocation9 + $0x70] sm:$0xff]  }
 0x635   :  { %3257 = vmatprep.mubr.msk.bf16.mxu0 %vm3807_vm0, %v3805_v0  ;;  %3242 = vmatpush3.bf16.msra.mxu0 %v3513_v13 }
 0x636   :  { %3243 = vmatprep.subr.bf16.mxu0 %v3805_v0 }
 0x639   :  { %3244 = vmatpush3.bf16.msra.mxu0 %v3514_v14  ;;  %v3540_v14 = vld [vmem:[#allocation9 + $0x60] sm:$0xff]  }
 0x63a   :  { %3245 = vmatprep.subr.bf16.mxu0 %v3805_v0 }
 0x63d   :  { %3246 = vmatpush3.bf16.msra.mxu0 %v3515_v15  ;;  %v3541_v15 = vld [vmem:[#allocation9 + $0x58] sm:$0xff]  }
 0x63e   :  { %3247 = vmatprep.subr.bf16.mxu0 %v3805_v0 }
 0x641   :  { %3248 = vmatpush3.bf16.msra.mxu0 %v3516_v32 }
 0x642   :  { %3249 = vmatprep.subr.bf16.mxu0 %v3805_v0 }
 0x645   :  { %3250 = vmatpush3.bf16.msra.mxu0 %v3517_v33 }
 0x646   :  { %3251 = vmatprep.subr.bf16.mxu0 %v3805_v0 }
 0x649   :  { %3252 = vmatpush3.bf16.msra.mxu0 %v3518_v34 }
 0x64a   :  { %3253 = vmatprep.subr.bf16.mxu0 %v3805_v0 }
 0x64d   :  { %3254 = vmatpush3.bf16.msra.mxu0 %v3519_v35  ;;  %v3548_v35 = vld [vmem:[#allocation9 + $0xa0] sm:$0xff]  }
 0x64e   :  { %3255 = vmatprep.subr.bf16.mxu0 %v3805_v0 }
 0x651   :  { %3256 = vmatpush3.bf16.msra.mxu0 %v3520_v24  ;;  %v3549_v24 = vld [vmem:[#allocation9 + $0x98] sm:$0xff]  }
 0x652   :  { %3281 = vmatprep.subr.bf16.mxu0 %v3805_v0 }
 0x6d4   :  { %v4106_v17 = vpop.f32.mrf.mxu0 }
 0x6d6   :  { %v3179_v18 = vpop.f32.mrf.mxu0 }
 0x6d7   :  { %v3542_v18 = vld [vmem:[#allocation9 + $0x50] sm:$0xff]  }
 0x6d8   :  { %v1324_v19 = vpop.f32.mrf.mxu0 }
 0x6d9   :  { %v3543_v19 = vld [vmem:[#allocation9 + $0x48] sm:$0xff]  }
 0x6da   :  { %v3180_v20 = vpop.f32.mrf.mxu0 }
 0x6db   :  { %v3544_v20 = vld [vmem:[#allocation9 + $0x40] sm:$0xff]  }
 0x6f4   :  { %v1550_v22 = vpop.f32.mrf.mxu0 }
 0x6f5   :  { %v1551_v23 = vadd.f32 %v2712_v21, %v1550_v22  ;;  %v3545_v21 = vld [vmem:[#allocation9 + $0xb8] sm:$0xff]   ;;  %v3546_v22 = vld [vmem:[#allocation9 + $0xb0] sm:$0xff]  }
 0x6f6   :  { %v3219_v25 = vpop.f32.mrf.mxu0 }
 0x6f7   :  { %3603 = vtanh.f32 %v1551_v23  ;;  %v3547_v23 = vld [vmem:[#allocation9 + $0xa8] sm:$0xff]   ;;  %v2751_v25 = vld [vmem:[#allocation10] ss:$0 sm:$0xff] }
 0x6f8   :  { %v1553_v26 = vpop.f32.mrf.mxu0 }
 0x6fa   :  { %v3220_v27 = vpop.f32.mrf.mxu0 }
 0x704   :  { %v3604_v28 = vpop.eup %3603 }
 0x705   :  { %v1557_v31 = vpack.c.bf16 %v3604_v28, %v3604_v28 }
 0x707   :  { %3238 = vmatmul.mubr.bf16.vlgmr.msra.gmra.mxu1 %v1557_v31 }
 0x708   :  { %3277 = vmatprep.mubr.msk.bf16.mxu1 %vm3807_vm0, %v3805_v0  ;;  %3262 = vmatpush3.bf16.msra.mxu1 %v3521_v29  ;;  %v3550_v29 = vld [vmem:[#allocation9 + $0x90] sm:$0xff]  }
 0x709   :  { %3263 = vmatprep.subr.bf16.mxu1 %v3805_v0 }
 0x70c   :  { %3264 = vmatpush3.bf16.msra.mxu1 %v3522_v36  ;;  %v3551_v36 = vld [vmem:[#allocation9 + $0x88] sm:$0xff]  }
 0x70d   :  { %3265 = vmatprep.subr.bf16.mxu1 %v3805_v0 }
 0x710   :  { %3266 = vmatpush3.bf16.msra.mxu1 %v3523_v37  ;;  %v3552_v37 = vld [vmem:[#allocation9 + $0x80] sm:$0xff]  }
 0x711   :  { %3267 = vmatprep.subr.bf16.mxu1 %v3805_v0 }
 0x714   :  { %3268 = vmatpush3.bf16.msra.mxu1 %v3524_v45 }
 0x715   :  { %3269 = vmatprep.subr.bf16.mxu1 %v3805_v0 }
 0x718   :  { %3270 = vmatpush3.bf16.msra.mxu1 %v3525_v46 }
 0x719   :  { %3271 = vmatprep.subr.bf16.mxu1 %v3805_v0 }
 0x71c   :  { %3272 = vmatpush3.bf16.msra.mxu1 %v3526_v47 }
 0x71d   :  { %3273 = vmatprep.subr.bf16.mxu1 %v3805_v0 }
 0x720   :  { %3274 = vmatpush3.bf16.msra.mxu1 %v3527_v48  ;;  %v3556_v48 = vld [vmem:[#allocation9 + $0xe0] sm:$0xff]  }
 0x721   :  { %3275 = vmatprep.subr.bf16.mxu1 %v3805_v0 }
 0x724   :  { %3276 = vmatpush3.bf16.msra.mxu1 %v3528_v49  ;;  %v3557_v49 = vld [vmem:[#allocation9 + $0xd8] sm:$0xff]  }
 0x725   :  { %3301 = vmatprep.subr.bf16.mxu1 %v3805_v0 }
 0x7c7   :  { %v1665_v30 = vpop.f32.mrf.mxu1 }
 0x7c8   :  { %v1666_v39 = vadd.f32 %v2722_v38, %v1665_v30  ;;  %v3553_v38 = vld [vmem:[#allocation9 + $0xf8] sm:$0xff]   ;;  %v3554_v30 = vld [vmem:[#allocation9 + $0xf0] sm:$0xff]  }
 0x7c9   :  { %v3239_v40 = vpop.f32.mrf.mxu1 }
 0x7ca   :  { %3605 = vtanh.f32 %v1666_v39  ;;  %v3555_v39 = vld [vmem:[#allocation9 + $0xe8] sm:$0xff]   ;;  %v2760_v40 = vld [vmem:[#allocation10 + $0x1] ss:$0 sm:$0xff] }
 0x7cb   :  { %v1668_v41 = vpop.f32.mrf.mxu1 }
 0x7cd   :  { %v3240_v42 = vpop.f32.mrf.mxu1 }
 0x7d7   :  { %v3606_v43 = vpop.eup %3605 }
 0x7d8   :  { %v1672_v44 = vpack.c.bf16 %v3606_v43, %v3606_v43 }
 0x7da   :  { %3258 = vmatmul.mubr.bf16.vlgmr.msra.gmra.mxu0 %v1672_v44 }
 0x7db   :  { %3297 = vmatprep.mubr.msk.bf16.mxu0 %vm3807_vm0, %v3805_v0  ;;  %3282 = vmatpush3.bf16.msra.mxu0 %v3529_v50  ;;  %v3558_v50 = vld [vmem:[#allocation9 + $0xd0] sm:$0xff]  }
 0x7dc   :  { %3283 = vmatprep.subr.bf16.mxu0 %v3805_v0 }
 0x7df   :  { %3284 = vmatpush3.bf16.msra.mxu0 %v3530_v51  ;;  %v3559_v51 = vld [vmem:[#allocation9 + $0xc8] sm:$0xff]  }
 0x7e0   :  { %3285 = vmatprep.subr.bf16.mxu0 %v3805_v0 }
 0x7e3   :  { %3286 = vmatpush3.bf16.msra.mxu0 %v3531_v52  ;;  %v3560_v52 = vld [vmem:[#allocation9 + $0xc0] sm:$0xff]  }
 0x7e4   :  { %3287 = vmatprep.subr.bf16.mxu0 %v3805_v0 }
 0x7e7   :  { %3288 = vmatpush3.bf16.msra.mxu0 %v3532_v61 }
 0x7e8   :  { %3289 = vmatprep.subr.bf16.mxu0 %v3805_v0 }
 0x7eb   :  { %3290 = vmatpush3.bf16.msra.mxu0 %v3533_v62 }
 0x7ec   :  { %3291 = vmatprep.subr.bf16.mxu0 %v3805_v0 }
 0x7ef   :  { %3292 = vmatpush3.bf16.msra.mxu0 %v3534_v63 }
 0x7f0   :  { %3293 = vmatprep.subr.bf16.mxu0 %v3805_v0 }
 0x7f3   :  { %3294 = vmatpush3.bf16.msra.mxu0 %v3535_v1  ;;  %v3564_v1 = vld [vmem:[#allocation9 + $0x120] sm:$0xff]  }
 0x7f4   :  { %3295 = vmatprep.subr.bf16.mxu0 %v3805_v0 }
 0x7f7   :  { %3296 = vmatpush3.bf16.msra.mxu0 %v3536_v2  ;;  %v3565_v2 = vld [vmem:[#allocation9 + $0x118] sm:$0xff]  }
 0x7f8   :  { %3321 = vmatprep.subr.bf16.mxu0 %v3805_v0 }
 0x89a   :  { %v1780_v54 = vpop.f32.mrf.mxu0 }
 0x89b   :  { %v1781_v55 = vadd.f32 %v2732_v53, %v1780_v54  ;;  %v3561_v53 = vld [vmem:[#allocation9 + $0x138] sm:$0xff]   ;;  %v3562_v54 = vld [vmem:[#allocation9 + $0x130] sm:$0xff]  }
 0x89c   :  { %v3259_v56 = vpop.f32.mrf.mxu0 }
 0x89d   :  { %3607 = vtanh.f32 %v1781_v55  ;;  %v3563_v55 = vld [vmem:[#allocation9 + $0x128] sm:$0xff]   ;;  %v2769_v56 = vld [vmem:[#allocation10 + $0x2] ss:$0 sm:$0xff] }
 0x89e   :  { %v1783_v57 = vpop.f32.mrf.mxu0 }
 0x8a0   :  { %v3260_v58 = vpop.f32.mrf.mxu0 }
 0x8aa   :  { %v3608_v59 = vpop.eup %3607 }
 0x8ab   :  { %v1787_v60 = vpack.c.bf16 %v3608_v59, %v3608_v59 }
 0x8ad   :  { %3278 = vmatmul.mubr.bf16.vlgmr.msra.gmra.mxu1 %v1787_v60 }
 0x8ae   :  { %3317 = vmatprep.mubr.msk.bf16.mxu1 %vm3807_vm0, %v3805_v0  ;;  %3302 = vmatpush3.bf16.msra.mxu1 %v3537_v3  ;;  %v3566_v3 = vld [vmem:[#allocation9 + $0x110] sm:$0xff]  }
 0x8af   :  { %3303 = vmatprep.subr.bf16.mxu1 %v3805_v0 }
 0x8b2   :  { %3304 = vmatpush3.bf16.msra.mxu1 %v3538_v4  ;;  %v3567_v4 = vld [vmem:[#allocation9 + $0x108] sm:$0xff]  }
 0x8b3   :  { %3305 = vmatprep.subr.bf16.mxu1 %v3805_v0 }
 0x8b6   :  { %3306 = vmatpush3.bf16.msra.mxu1 %v3539_v5  ;;  %v3568_v5 = vld [vmem:[#allocation9 + $0x100] sm:$0xff]  }
 0x8b7   :  { %3307 = vmatprep.subr.bf16.mxu1 %v3805_v0 }
 0x8ba   :  { %3308 = vmatpush3.bf16.msra.mxu1 %v3540_v14 }
 0x8bb   :  { %3309 = vmatprep.subr.bf16.mxu1 %v3805_v0 }
 0x8be   :  { %3310 = vmatpush3.bf16.msra.mxu1 %v3541_v15 }
 0x8bf   :  { %3311 = vmatprep.subr.bf16.mxu1 %v3805_v0 }
 0x8c2   :  { %3312 = vmatpush3.bf16.msra.mxu1 %v3542_v18 }
 0x8c3   :  { %3313 = vmatprep.subr.bf16.mxu1 %v3805_v0 }
 0x8c6   :  { %3314 = vmatpush3.bf16.msra.mxu1 %v3543_v19  ;;  %v3572_v19 = vld [vmem:[#allocation9 + $0x160] sm:$0xff]  }
 0x8c7   :  { %3315 = vmatprep.subr.bf16.mxu1 %v3805_v0 }
 0x8ca   :  { %3316 = vmatpush3.bf16.msra.mxu1 %v3544_v20  ;;  %v3573_v20 = vld [vmem:[#allocation9 + $0x158] sm:$0xff]  }
 0x8cb   :  { %3341 = vmatprep.subr.bf16.mxu1 %v3805_v0 }
 0x96d   :  { %v1895_v7 = vpop.f32.mrf.mxu1 }
 0x96e   :  { %v1896_v8 = vadd.f32 %v2742_v6, %v1895_v7  ;;  %v3569_v6 = vld [vmem:[#allocation9 + $0x178] sm:$0xff]   ;;  %v3570_v7 = vld [vmem:[#allocation9 + $0x170] sm:$0xff]  }
 0x96f   :  { %v3279_v9 = vpop.f32.mrf.mxu1 }
 0x970   :  { %3609 = vtanh.f32 %v1896_v8  ;;  %v3571_v8 = vld [vmem:[#allocation9 + $0x168] sm:$0xff]   ;;  %v2778_v9 = vld [vmem:[#allocation10 + $0x3] ss:$0 sm:$0xff] }
 0x971   :  { %v1898_v10 = vpop.f32.mrf.mxu1 }
 0x973   :  { %v3280_v11 = vpop.f32.mrf.mxu1 }
 0x97d   :  { %v3610_v12 = vpop.eup %3609 }
 0x97e   :  { %v1902_v13 = vpack.c.bf16 %v3610_v12, %v3610_v12 }
 0x980   :  { %3298 = vmatmul.mubr.bf16.vlgmr.msra.gmra.mxu0 %v1902_v13 }
 0x981   :  { %3337 = vmatprep.mubr.msk.bf16.mxu0 %vm3807_vm0, %v3805_v0  ;;  %3322 = vmatpush3.bf16.msra.mxu0 %v3545_v21  ;;  %v3574_v21 = vld [vmem:[#allocation9 + $0x150] sm:$0xff]  }
 0x982   :  { %3323 = vmatprep.subr.bf16.mxu0 %v3805_v0 }
 0x985   :  { %3324 = vmatpush3.bf16.msra.mxu0 %v3546_v22  ;;  %v3575_v22 = vld [vmem:[#allocation9 + $0x148] sm:$0xff]  }
 0x986   :  { %3325 = vmatprep.subr.bf16.mxu0 %v3805_v0 }
 0x989   :  { %3326 = vmatpush3.bf16.msra.mxu0 %v3547_v23  ;;  %v3576_v23 = vld [vmem:[#allocation9 + $0x140] sm:$0xff]  }
 0x98a   :  { %3327 = vmatprep.subr.bf16.mxu0 %v3805_v0 }
 0x98d   :  { %3328 = vmatpush3.bf16.msra.mxu0 %v3548_v35  ;;  %v2652_v35 = vld [vmem:[%s4211_s7 + $0x5] ss:$0 sm:$0xff] }
 0x98e   :  { %3329 = vmatprep.subr.bf16.mxu0 %v3805_v0 }
 0x991   :  { %3330 = vmatpush3.bf16.msra.mxu0 %v3549_v24  ;;  %v862_v24 = vadd.f32 %v2652_v35, %v4052_v16 }
 0x992   :  { %3331 = vmatprep.subr.bf16.mxu0 %v3805_v0 }
 0x995   :  { %3332 = vmatpush3.bf16.msra.mxu0 %v3550_v29 }
 0x996   :  { %3333 = vmatprep.subr.bf16.mxu0 %v3805_v0 }
 0x999   :  { %3334 = vmatpush3.bf16.msra.mxu0 %v3551_v36 }
 0x99a   :  { %3335 = vmatprep.subr.bf16.mxu0 %v3805_v0 }
 0x99d   :  { %3336 = vmatpush3.bf16.msra.mxu0 %v3552_v37 }
 0x99e   :  { %3361 = vmatprep.subr.bf16.mxu0 %v3805_v0 }
 0xa40   :  { %v2008_v26 = vpop.f32.mrf.mxu0 }
 0xa41   :  { %v2009_v27 = vadd.f32 %v2751_v25, %v2008_v26  ;;  %v2787_v25 = vld [vmem:[#allocation10 + $0x4] ss:$0 sm:$0xff] }
 0xa42   :  { %v3299_v28 = vpop.f32.mrf.mxu0 }
 0xa43   :  { %3611 = vtanh.f32 %v2009_v27 }
 0xa44   :  { %v2011_v31 = vpop.f32.mrf.mxu0 }
 0xa46   :  { %v3300_v32 = vpop.f32.mrf.mxu0 }
 0xa50   :  { %v3612_v33 = vpop.eup %3611 }
 0xa51   :  { %v2015_v34 = vpack.c.bf16 %v3612_v33, %v3612_v33 }
 0xa53   :  { %3318 = vmatmul.mubr.bf16.vlgmr.msra.gmra.mxu1 %v2015_v34 }
 0xa54   :  { %3357 = vmatprep.mubr.msk.bf16.mxu1 %vm3807_vm0, %v3805_v0  ;;  %3342 = vmatpush3.bf16.msra.mxu1 %v3553_v38 }
 0xa55   :  { %3343 = vmatprep.subr.bf16.mxu1 %v3805_v0 }
 0xa58   :  { %3344 = vmatpush3.bf16.msra.mxu1 %v3554_v30 }
 0xa59   :  { %3345 = vmatprep.subr.bf16.mxu1 %v3805_v0 }
 0xa5c   :  { %3346 = vmatpush3.bf16.msra.mxu1 %v3555_v39 }
 0xa5d   :  { %3347 = vmatprep.subr.bf16.mxu1 %v3805_v0 }
 0xa60   :  { %3348 = vmatpush3.bf16.msra.mxu1 %v3556_v48 }
 0xa61   :  { %3349 = vmatprep.subr.bf16.mxu1 %v3805_v0 }
 0xa64   :  { %3350 = vmatpush3.bf16.msra.mxu1 %v3557_v49 }
 0xa65   :  { %3351 = vmatprep.subr.bf16.mxu1 %v3805_v0 }
 0xa68   :  { %3352 = vmatpush3.bf16.msra.mxu1 %v3558_v50 }
 0xa69   :  { %3353 = vmatprep.subr.bf16.mxu1 %v3805_v0 }
 0xa6c   :  { %3354 = vmatpush3.bf16.msra.mxu1 %v3559_v51 }
 0xa6d   :  { %3355 = vmatprep.subr.bf16.mxu1 %v3805_v0 }
 0xa70   :  { %3356 = vmatpush3.bf16.msra.mxu1 %v3560_v52 }
 0xa71   :  { %3381 = vmatprep.subr.bf16.mxu1 %v3805_v0 }
 0xb13   :  { %v2123_v41 = vpop.f32.mrf.mxu1 }
 0xb14   :  { %v2124_v42 = vadd.f32 %v2760_v40, %v2123_v41  ;;  %v2692_v41 = vld [vmem:[%s4217_s13 + $0x4] ss:$0 sm:$0xff] }
 0xb15   :  { %v3319_v43 = vpop.f32.mrf.mxu1 }
 0xb16   :  { %3613 = vtanh.f32 %v2124_v42  ;;  %v1322_v42 = vadd.f32 %v2692_v41, %v4106_v17 }
 0xb17   :  { %v2126_v44 = vpop.f32.mrf.mxu1 }
 0xb19   :  { %v3320_v45 = vpop.f32.mrf.mxu1 }
 0xb23   :  { %v3614_v46 = vpop.eup %3613 }
 0xb24   :  { %v2130_v47 = vpack.c.bf16 %v3614_v46, %v3614_v46 }
 0xb26   :  { %3338 = vmatmul.mubr.bf16.vlgmr.msra.gmra.mxu0 %v2130_v47 }
 0xb27   :  { %3377 = vmatprep.mubr.msk.bf16.mxu0 %vm3807_vm0, %v3805_v0  ;;  %3362 = vmatpush3.bf16.msra.mxu0 %v3561_v53 }
 0xb28   :  { %3363 = vmatprep.subr.bf16.mxu0 %v3805_v0 }
 0xb2b   :  { %3364 = vmatpush3.bf16.msra.mxu0 %v3562_v54 }
 0xb2c   :  { %3365 = vmatprep.subr.bf16.mxu0 %v3805_v0 }
 0xb2f   :  { %3366 = vmatpush3.bf16.msra.mxu0 %v3563_v55 }
 0xb30   :  { %3367 = vmatprep.subr.bf16.mxu0 %v3805_v0 }
 0xb33   :  { %3368 = vmatpush3.bf16.msra.mxu0 %v3564_v1 }
 0xb34   :  { %3369 = vmatprep.subr.bf16.mxu0 %v3805_v0 }
 0xb37   :  { %3370 = vmatpush3.bf16.msra.mxu0 %v3565_v2 }
 0xb38   :  { %3371 = vmatprep.subr.bf16.mxu0 %v3805_v0 }
 0xb3b   :  { %3372 = vmatpush3.bf16.msra.mxu0 %v3566_v3 }
 0xb3c   :  { %3373 = vmatprep.subr.bf16.mxu0 %v3805_v0 }
 0xb3f   :  { %3374 = vmatpush3.bf16.msra.mxu0 %v3567_v4 }
 0xb40   :  { %3375 = vmatprep.subr.bf16.mxu0 %v3805_v0 }
 0xb43   :  { %3376 = vmatpush3.bf16.msra.mxu0 %v3568_v5 }
 0xbe6   :  { %v2238_v57 = vpop.f32.mrf.mxu0 }
 0xbe7   :  { %v2239_v58 = vadd.f32 %v2769_v56, %v2238_v57 }
 0xbe8   :  { %v3339_v59 = vpop.f32.mrf.mxu0 }
 0xbe9   :  { %3615 = vtanh.f32 %v2239_v58 }
 0xbea   :  { %v2241_v60 = vpop.f32.mrf.mxu0 }
 0xbec   :  { %v3340_v61 = vpop.f32.mrf.mxu0 }
 0xbf6   :  { %v3616_v62 = vpop.eup %3615 }
 0xbf7   :  { %v2245_v63 = vpack.c.bf16 %v3616_v62, %v3616_v62 }
 0xbf9   :  { %3358 = vmatmul.mubr.bf16.vlgmr.msra.gmra.mxu1 %v2245_v63 }
 0xbfa   :  { %3397 = vmatprep.mubr.msk.bf16.mxu1 %vm3807_vm0, %v3805_v0  ;;  %3382 = vmatpush3.bf16.msra.mxu1 %v3569_v6 }
 0xbfb   :  { %3383 = vmatprep.subr.bf16.mxu1 %v3805_v0 }
 0xbfe   :  { %3384 = vmatpush3.bf16.msra.mxu1 %v3570_v7 }
 0xbff   :  { %3385 = vmatprep.subr.bf16.mxu1 %v3805_v0 }
 0xc02   :  { %3386 = vmatpush3.bf16.msra.mxu1 %v3571_v8 }
 0xc03   :  { %3387 = vmatprep.subr.bf16.mxu1 %v3805_v0 }
 0xc06   :  { %3388 = vmatpush3.bf16.msra.mxu1 %v3572_v19 }
 0xc07   :  { %3389 = vmatprep.subr.bf16.mxu1 %v3805_v0 }
 0xc0a   :  { %3390 = vmatpush3.bf16.msra.mxu1 %v3573_v20 }
 0xc0b   :  { %3391 = vmatprep.subr.bf16.mxu1 %v3805_v0 }
 0xc0e   :  { %3392 = vmatpush3.bf16.msra.mxu1 %v3574_v21 }
 0xc0f   :  { %3393 = vmatprep.subr.bf16.mxu1 %v3805_v0 }
 0xc12   :  { %3394 = vmatpush3.bf16.msra.mxu1 %v3575_v22 }
 0xc13   :  { %3395 = vmatprep.subr.bf16.mxu1 %v3805_v0  ;;  %v2796_v0 = vld [vmem:[#allocation10 + $0x5] ss:$0 sm:$0xff] }
 0xc16   :  { %3396 = vmatpush3.bf16.msra.mxu1 %v3576_v23 }
 0xcb9   :  { %v2353_v10 = vpop.f32.mrf.mxu1 }
 0xcba   :  { %v2354_v11 = vadd.f32 %v2778_v9, %v2353_v10 }
 0xcbb   :  { %v3359_v12 = vpop.f32.mrf.mxu1 }
 0xcbc   :  { %3617 = vtanh.f32 %v2354_v11 }
 0xcbd   :  { %v2356_v13 = vpop.f32.mrf.mxu1 }
 0xcbf   :  { %v3360_v14 = vpop.f32.mrf.mxu1 }
 0xcc9   :  { %v3618_v15 = vpop.eup %3617 }
 0xcca   :  { %v2360_v18 = vpack.c.bf16 %v3618_v15, %v3618_v15 }
 0xccc   :  { %3378 = vmatmul.mubr.bf16.vlgmr.msra.gmra.mxu0 %v2360_v18 }
 0xd8c   :  { %v2468_v26 = vpop.f32.mrf.mxu0 }
 0xd8d   :  { %v2469_v27 = vadd.f32 %v2787_v25, %v2468_v26 }
 0xd8e   :  { %v3379_v28 = vpop.f32.mrf.mxu0 }
 0xd8f   :  { %3619 = vtanh.f32 %v2469_v27 }
 0xd90   :  { %v2471_v31 = vpop.f32.mrf.mxu0  ;;  %3621 = vtanh.f32 %v862_v24 }
 0xd92   :  { %v3380_v32 = vpop.f32.mrf.mxu0 }
 0xd9c   :  { %v3620_v33 = vpop.eup %3619 }
 0xd9d   :  { %v2475_v34 = vpack.c.bf16 %v3620_v33, %v3620_v33  ;;  %v3622_v37 = vpop.eup %3621 }
 0xd9f   :  { %3398 = vmatmul.mubr.bf16.vlgmr.msra.gmra.mxu1 %v2475_v34 }
 0xe5f   :  { %v2583_v29 = vpop.f32.mrf.mxu1 }
 0xe60   :  { %v2584_v36 = vadd.f32 %v2796_v0, %v2583_v29 }
 0xe61   :  { %v3399_v38 = vpop.f32.mrf.mxu1 }
 0xe62   :  { %v2589_v30 = vmul.f32 %v3622_v37, %v2584_v36 }
 0xe63   :  { %v2586_v39 = vpop.f32.mrf.mxu1 }
 0xe64   :  { %2590 = vadd.xlane.f32.xlu0 %v2589_v30 }
 0xe65   :  { %v3400_v40 = vpop.f32.mrf.mxu1 }
 0xeed   :  { %v2591_v43 = vpop.xlane.xlu0 %2590 }
 0xeee   :  { %v2592_v44 = vadd.f32 %v2591_v43, %v1322_v42 }
 0xef0   :  { %2594 = vst.msk [vmem:[%s4218_s14] sm:$0xff] %vm2593_vm3, %v2592_v44 }
 0xef1   :  { %2599 = vsyncpa [#allocation3], 1 }
 0xef2   :  { %2600 = vsyncpa [#allocation5], 1 }
 0xef3   :  { %2601 = vsyncpa [#allocation8], 1 }
 0xef4   :  { %2602 = vsyncpa [#allocation11], 1 }
 0xef5   :  { %2603 = vsyncpa [#allocation14], 1 }

</bundles_post_ra>
